<compile_context>
chip_gen: v6e
topology: v6e:2x2x1
jax: 0.10.0
libtpu: 0.0.40
codegen_flags: <defaults>
</compile_context>

<pallas_src>
import functools

import jax
import jax.numpy as jnp
import numpy as np
from jax.experimental import pallas as pl
from jax.experimental.pallas import tpu as pltpu

EPS = 1e-5


# ----------------------------- kernel helpers -------------------------------
def _conv_taps(flat_bf16, pb_ref, acc_ref, N, HP, Lout):
    """3x3 conv as 3 pair-banded matmuls with output-row-shifted accumulation.

    flat_bf16: (N*HP, Lin) bf16 input slab (W padding + row pairing already
               folded into the band -> no padded scratch, no memsets).
    pb_ref:    (3, Lin, Lout) bf16 pair-banded weights.
    acc_ref:   (N, HP, Lout) f32 scratch accumulator.
    Returns (N*HP, Lout) f32.
    """
    t1 = jnp.dot(flat_bf16, pb_ref[1], preferred_element_type=jnp.float32)
    acc_ref[...] = t1.reshape(N, HP, Lout)
    if HP > 1:
        # tap 0 feeds the slab row below, tap 2 the row above; contributions
        # shifted out of range are exactly the zero halo of 'SAME' padding.
        t0 = jnp.dot(flat_bf16, pb_ref[0],
                     preferred_element_type=jnp.float32).reshape(N, HP, Lout)
        t2 = jnp.dot(flat_bf16, pb_ref[2],
                     preferred_element_type=jnp.float32).reshape(N, HP, Lout)
        acc_ref[:, 1:, :] = acc_ref[:, 1:, :] + t0[:, :HP - 1, :]
        acc_ref[:, :HP - 1, :] = acc_ref[:, :HP - 1, :] + t2[:, 1:, :]
    return acc_ref[...].reshape(N * HP, Lout)


def _bn_relu(v, fold_ref, spread_ref, gb_ref, inv_m):
    """Training-mode BatchNorm + ReLU on a (rows, L) lane-dense slab.

    v:      (rows, L) f32; channel is the fastest factor of the lane index.
    fold:   (L, C) 0/1 matrix folding lane columns onto channels.
    spread: (C, L) 0/1 matrix broadcasting per-channel values back to lanes.
    gb:     (2, C) = [gamma; beta].   inv_m = 1 / (elements per channel).
    """
    row2 = jax.lax.broadcasted_iota(jnp.int32, (2, 1), 0)      # [[0],[1]]
    colsum = jnp.sum(v, axis=0, keepdims=True)                 # (1, L)
    colsq = jnp.sum(v * v, axis=0, keepdims=True)              # (1, L)
    stats = jnp.where(row2 == 0, colsum, colsq)                # (2, L) merged
    folded = jnp.dot(stats, fold_ref[...],
                     preferred_element_type=jnp.float32) * inv_m   # (2, C)
    mean = folded[0:1, :]
    var = folded[1:2, :] - mean * mean          # biased variance (train mode)
    scale = gb_ref[0:1, :] * jax.lax.rsqrt(var + EPS)          # (1, C)
    shift = gb_ref[1:2, :] - mean * scale                      # (1, C)
    ss = jnp.where(row2 == 0, scale, shift)                    # (2, C) merged
    lanes = jnp.dot(ss, spread_ref[...],
                    preferred_element_type=jnp.float32)        # (2, L)
    return jnp.maximum(v * lanes[0:1, :] + lanes[1:2, :], 0.0)


def resblock_kernel(x_ref, pb1_ref, pb2_ref, gb2_ref, gb1_ref,
                    fold_r_ref, spread_r_ref, fold_i_ref, spread_i_ref,
                    o_ref, acc1_ref, acc2_ref, *, N, HP, L_in, L_res, inv_m):
    R = N * HP
    x_f32 = x_ref[...].reshape(R, L_in)          # residual + conv1 input
    xb = x_f32.astype(jnp.bfloat16)              # cast ONCE for the MXU

    # conv1 (bias dropped: cancelled by training-mode BN) -> BN2 -> ReLU
    a1 = _conv_taps(xb, pb1_ref, acc1_ref, N, HP, L_res)
    x1 = _bn_relu(a1, fold_r_ref, spread_r_ref, gb2_ref, inv_m)

    # conv2 -> +residual -> BN1 -> ReLU      (x1 never leaves VMEM/vregs)
    a2 = _conv_taps(x1.astype(jnp.bfloat16), pb2_ref, acc2_ref, N, HP, L_in)
    y = _bn_relu(a2 + x_f32, fold_i_ref, spread_i_ref, gb1_ref, inv_m)
    o_ref[...] = y.reshape(N, HP, L_in)


# ----------------------------- wrapper helpers -------------------------------
def _pair_band_selector(W, P, KH=3, KW=3):
    """0/1 selector S[t, b, p, a, q, kh, kw]: tap t of the pair-banded conv
    maps input (sub-row b, column p) to output (sub-row a, column q) through
    conv tap (kh, kw).  Folds BOTH the W-direction 'SAME' zero padding and the
    P-row pairing into the band (no padded input columns)."""
    S = np.zeros((KH, P, W, P, W, KH, KW), np.float32)
    for t in range(KH):
        for a in range(P):
            for b in range(P):
                kh = (t - 1) * P + b - a + 1
                if not (0 <= kh < KH):
                    continue
                for q in range(W):
                    for kw in range(KW):
                        p = q + kw - 1
                        if 0 <= p < W:
                            S[t, b, p, a, q, kh, kw] = 1.0
    return S


def _pair_banded_weights(w, W, P):
    """(3,3,Cin,Cout) HWIO conv weight -> (3, P*W*Cin, P*W*Cout) pair-banded
    matrices: each of the 3 taps is ONE lane-dense matmul over a slab row."""
    KH, KW, Cin, Cout = w.shape
    S = jnp.asarray(_pair_band_selector(W, P, KH, KW))
    pb = jnp.einsum('tbpaqhw,hwio->tbpiaqo', S, w.astype(jnp.float32))
    return pb.reshape(KH, P * W * Cin, P * W * Cout)


def _fold_matrix(reps, C):
    """(reps*C, C) 0/1 matrix folding lane column (k, c) -> channel c."""
    return jnp.tile(jnp.eye(C, dtype=jnp.float32), (reps, 1))


def _vmem_limit_bytes(operands, out_bytes):
    """VMEM limit from actual operand sizes, capped per TPU generation."""
    total = out_bytes + sum(int(np.prod(a.shape)) * a.dtype.itemsize
                            for a in operands)
    want = 4 * total + (2 << 20)           # headroom for intermediates
    try:
        cap = int(pltpu.get_tpu_info().vmem_capacity_bytes) * 3 // 4
    except Exception:
        cap = 48 << 20                     # safe under v7x's 64 MiB VMEM
    return int(min(max(want, 16 << 20), cap))


def res_block_forward(x_nchw, params):
    """Forward pass matching _ResBlock.forward. Input/output are NCHW f32."""
    w1, b1, w2, b2, g1, be1, g2, be2 = params
    del b1, b2   # exactly cancelled by training-mode BN mean subtraction
    N, Cin, H, W = x_nchw.shape
    Cr = w1.shape[-1]

    # Pair rows only when it is needed for >=128-lane slabs (and H is even).
    P = 2 if (H % 2 == 0 and min(Cin, Cr) * W < 128) else 1
    HP = H // P
    L_in, L_res = P * W * Cin, P * W * Cr

    # NCHW -> NHWC -> pair-row lane-dense slab (pure wrapper-side reshapes).
    x_slab = jnp.transpose(x_nchw, (0, 2, 3, 1)).astype(jnp.float32)
    x_slab = x_slab.reshape(N, HP, L_in)

    pb1 = _pair_banded_weights(w1, W, P).astype(jnp.bfloat16)   # (3,L_in,L_res)
    pb2 = _pair_banded_weights(w2, W, P).astype(jnp.bfloat16)   # (3,L_res,L_in)

    gb2 = jnp.stack([g2, be2]).astype(jnp.float32)              # (2, Cr)
    gb1 = jnp.stack([g1, be1]).astype(jnp.float32)              # (2, Cin)

    fold_r = _fold_matrix(P * W, Cr)        # (L_res, Cr)
    fold_i = _fold_matrix(P * W, Cin)       # (L_in, Cin)

    operands = (x_slab, pb1, pb2, gb2, gb1,
                fold_r, jnp.transpose(fold_r), fold_i, jnp.transpose(fold_i))

    out_bytes = N * HP * L_in * 4
    vmem_limit = _vmem_limit_bytes(operands, out_bytes)

    vmem = pl.BlockSpec(memory_space=pltpu.MemorySpace.VMEM)
    kernel = functools.partial(resblock_kernel, N=N, HP=HP,
                               L_in=L_in, L_res=L_res,
                               inv_m=1.0 / float(N * H * W))
    out_slab = pl.pallas_call(
        kernel,
        out_shape=jax.ShapeDtypeStruct((N, HP, L_in), jnp.float32),
        in_specs=[vmem] * len(operands),
        out_specs=vmem,
        scratch_shapes=[
            pltpu.VMEM((N, HP, L_res), jnp.float32),   # conv1 accumulator
            pltpu.VMEM((N, HP, L_in), jnp.float32),    # conv2 accumulator
        ],
        compiler_params=pltpu.CompilerParams(vmem_limit_bytes=vmem_limit),
    )(*operands)

    # pair-row slab -> NHWC -> NCHW (wrapper-side reshape/transpose).
    return jnp.transpose(out_slab.reshape(N, H, W, Cin), (0, 3, 1, 2))


# ----------------------------- pure-JAX reference ---------------------------
def _bn_train(x_nhwc, g, b):
    mean = x_nhwc.mean(axis=(0, 1, 2), keepdims=True)
    var = ((x_nhwc - mean) ** 2).mean(axis=(0, 1, 2), keepdims=True)
    return (x_nhwc - mean) * jax.lax.rsqrt(var + EPS) * g + b


def ref_forward(x_nchw, params):
    w1, b1, w2, b2, g1, be1, g2, be2 = params
    x = jnp.transpose(x_nchw, (0, 2, 3, 1)).astype(jnp.float32)
    dn = ('NHWC', 'HWIO', 'NHWC')
    x1 = jax.lax.conv_general_dilated(x, w1, (1, 1), 'SAME',
                                      dimension_numbers=dn) + b1
    x1 = jnp.maximum(_bn_train(x1, g2, be2), 0.0)
    x1 = jax.lax.conv_general_dilated(x1, w2, (1, 1), 'SAME',
                                      dimension_numbers=dn) + b2
    out = jnp.maximum(_bn_train(x + x1, g1, be1), 0.0)
    return jnp.transpose(out, (0, 3, 1, 2))


if __name__ == "__main__":
    # small shapes consistent with the module
    N, Cin, Cr, H, W = 2, 4, 8, 16, 16

    key = jax.random.PRNGKey(0)
    k_x, k_w1, k_b1, k_w2, k_b2 = jax.random.split(key, 5)

    x = jax.random.normal(k_x, (N, Cin, H, W), jnp.float32)          # NCHW
    # conv weights in HWIO layout (3,3,Cin,Cout); deterministic init
    w1 = jax.random.normal(k_w1, (3, 3, Cin, Cr), jnp.float32) * 0.1
    b1 = jax.random.normal(k_b1, (Cr,), jnp.float32) * 0.1
    w2 = jax.random.normal(k_w2, (3, 3, Cr, Cin), jnp.float32) * 0.1
    b2 = jax.random.normal(k_b2, (Cin,), jnp.float32) * 0.1
    # BatchNorm affine params: PyTorch default init (gamma=1, beta=0)
    g1, be1 = jnp.ones((Cin,), jnp.float32), jnp.zeros((Cin,), jnp.float32)
    g2, be2 = jnp.ones((Cr,), jnp.float32), jnp.zeros((Cr,), jnp.float32)

    params = (w1, b1, w2, b2, g1, be1, g2, be2)

    out = jax.block_until_ready(jax.jit(res_block_forward)(x, params))
    ref = jax.block_until_ready(ref_forward(x, params))

    # bf16 MXU operands with f32 accumulation / f32 BN stats -> slightly
    # looser tolerance than a pure-f32 comparison.
    np.testing.assert_allclose(np.asarray(out), np.asarray(ref),
                               rtol=2e-2, atol=2e-2)
    print("KERNEL_OK")
</pallas_src>

<mosaic_0001>
module attributes {stable_mosaic.version = 11 : i64} {
  func.func @resblock_kernel(%arg0: memref<2x8x128xf32, #tpu.memory_space<vmem>>, %arg1: memref<3x128x256xbf16, #tpu.memory_space<vmem>>, %arg2: memref<3x256x128xbf16, #tpu.memory_space<vmem>>, %arg3: memref<2x8xf32, #tpu.memory_space<vmem>>, %arg4: memref<2x4xf32, #tpu.memory_space<vmem>>, %arg5: memref<256x8xf32, #tpu.memory_space<vmem>>, %arg6: memref<8x256xf32, #tpu.memory_space<vmem>>, %arg7: memref<128x4xf32, #tpu.memory_space<vmem>>, %arg8: memref<4x128xf32, #tpu.memory_space<vmem>>, %arg9: memref<2x8x128xf32, #tpu.memory_space<vmem>>, %arg10: memref<2x8x256xf32, #tpu.memory_space<vmem>>, %arg11: memref<2x8x128xf32, #tpu.memory_space<vmem>>) attributes {dimension_semantics = [], scalar_prefetch = 0 : i64, scratch_operands = 2 : i64, tpu.core_type = #tpu.core_type<tc>} {
    %c0 = arith.constant 0 : index
    %c0_0 = arith.constant 0 : index
    %c0_1 = arith.constant 0 : index
    %0 = vector.load %arg0[%c0, %c0_0, %c0_1] : memref<2x8x128xf32, #tpu.memory_space<vmem>>, vector<2x8x128xf32>
    %1 = vector.shape_cast %0 : vector<2x8x128xf32> to vector<16x128xf32>
    %2 = arith.truncf %1 : vector<16x128xf32> to vector<16x128xbf16>
    %c1 = arith.constant 1 : index
    %c0_2 = arith.constant 0 : index
    %c0_3 = arith.constant 0 : index
    %3 = vector.load %arg1[%c1, %c0_2, %c0_3] : memref<3x128x256xbf16, #tpu.memory_space<vmem>>, vector<1x128x256xbf16>
    %4 = vector.shape_cast %3 : vector<1x128x256xbf16> to vector<128x256xbf16>
    %cst = arith.constant dense<0.000000e+00> : vector<16x256xf32>
    %5 = tpu.matmul %2, %4, %cst {dimension_numbers = #tpu.dot_dimension_numbers<[1], [0], [0], [1], [0, 0, 1, 1], [], []>} : vector<16x128xbf16>, vector<128x256xbf16>, vector<16x256xf32> -> vector<16x256xf32>
    %6 = vector.shape_cast %5 : vector<16x256xf32> to vector<2x8x256xf32>
    %c0_4 = arith.constant 0 : index
    %c0_5 = arith.constant 0 : index
    %c0_6 = arith.constant 0 : index
    %7 = vector.load %arg10[%c0_4, %c0_5, %c0_6] : memref<2x8x256xf32, #tpu.memory_space<vmem>>, vector<2x8x256xf32>
    tpu.vector_store %arg10[%c0_4, %c0_5, %c0_6], %6 {strides = array<i32>} : memref<2x8x256xf32, #tpu.memory_space<vmem>>, vector<2x8x256xf32>,
    %c0_7 = arith.constant 0 : index
    %c0_8 = arith.constant 0 : index
    %c0_9 = arith.constant 0 : index
    %8 = vector.load %arg1[%c0_7, %c0_8, %c0_9] : memref<3x128x256xbf16, #tpu.memory_space<vmem>>, vector<1x128x256xbf16>
    %9 = vector.shape_cast %8 : vector<1x128x256xbf16> to vector<128x256xbf16>
    %cst_10 = arith.constant dense<0.000000e+00> : vector<16x256xf32>
    %10 = tpu.matmul %2, %9, %cst_10 {dimension_numbers = #tpu.dot_dimension_numbers<[1], [0], [0], [1], [0, 0, 1, 1], [], []>} : vector<16x128xbf16>, vector<128x256xbf16>, vector<16x256xf32> -> vector<16x256xf32>
    %11 = vector.shape_cast %10 : vector<16x256xf32> to vector<2x8x256xf32>
    %c2 = arith.constant 2 : index
    %c0_11 = arith.constant 0 : index
    %c0_12 = arith.constant 0 : index
    %12 = vector.load %arg1[%c2, %c0_11, %c0_12] : memref<3x128x256xbf16, #tpu.memory_space<vmem>>, vector<1x128x256xbf16>
    %13 = vector.shape_cast %12 : vector<1x128x256xbf16> to vector<128x256xbf16>
    %cst_13 = arith.constant dense<0.000000e+00> : vector<16x256xf32>
    %14 = tpu.matmul %2, %13, %cst_13 {dimension_numbers = #tpu.dot_dimension_numbers<[1], [0], [0], [1], [0, 0, 1, 1], [], []>} : vector<16x128xbf16>, vector<128x256xbf16>, vector<16x256xf32> -> vector<16x256xf32>
    %15 = vector.shape_cast %14 : vector<16x256xf32> to vector<2x8x256xf32>
    %c0_14 = arith.constant 0 : index
    %c1_15 = arith.constant 1 : index
    %c0_16 = arith.constant 0 : index
    %16 = vector.load %arg10[%c0_14, %c1_15, %c0_16] : memref<2x8x256xf32, #tpu.memory_space<vmem>>, vector<2x7x256xf32>
    %17 = vector.extract_strided_slice %11 {offsets = [0, 0, 0], sizes = [2, 7, 256], strides = [1, 1, 1]} : vector<2x8x256xf32> to vector<2x7x256xf32>
    %18 = arith.addf %16, %17 : vector<2x7x256xf32>
    %c0_17 = arith.constant 0 : index
    %c1_18 = arith.constant 1 : index
    %c0_19 = arith.constant 0 : index
    %19 = vector.load %arg10[%c0_17, %c1_18, %c0_19] : memref<2x8x256xf32, #tpu.memory_space<vmem>>, vector<2x7x256xf32>
    tpu.vector_store %arg10[%c0_17, %c1_18, %c0_19], %18 {strides = array<i32>} : memref<2x8x256xf32, #tpu.memory_space<vmem>>, vector<2x7x256xf32>,
    %c0_20 = arith.constant 0 : index
    %c0_21 = arith.constant 0 : index
    %c0_22 = arith.constant 0 : index
    %20 = vector.load %arg10[%c0_20, %c0_21, %c0_22] : memref<2x8x256xf32, #tpu.memory_space<vmem>>, vector<2x7x256xf32>
    %21 = vector.extract_strided_slice %15 {offsets = [0, 1, 0], sizes = [2, 7, 256], strides = [1, 1, 1]} : vector<2x8x256xf32> to vector<2x7x256xf32>
    %22 = arith.addf %20, %21 : vector<2x7x256xf32>
    %c0_23 = arith.constant 0 : index
    %c0_24 = arith.constant 0 : index
    %c0_25 = arith.constant 0 : index
    %23 = vector.load %arg10[%c0_23, %c0_24, %c0_25] : memref<2x8x256xf32, #tpu.memory_space<vmem>>, vector<2x7x256xf32>
    tpu.vector_store %arg10[%c0_23, %c0_24, %c0_25], %22 {strides = array<i32>} : memref<2x8x256xf32, #tpu.memory_space<vmem>>, vector<2x7x256xf32>,
    %c0_26 = arith.constant 0 : index
    %c0_27 = arith.constant 0 : index
    %c0_28 = arith.constant 0 : index
    %24 = vector.load %arg10[%c0_26, %c0_27, %c0_28] : memref<2x8x256xf32, #tpu.memory_space<vmem>>, vector<2x8x256xf32>
    %25 = vector.shape_cast %24 : vector<2x8x256xf32> to vector<16x256xf32>
    %26 = tpu.iota {dimensions = array<i32: 0>} : vector<2x1xi32>
    %cst_29 = arith.constant dense<0.000000e+00> : vector<256xf32>
    %27 = vector.multi_reduction <add>, %25, %cst_29 [0] : vector<16x256xf32> to vector<256xf32>
    %28 = vector.shape_cast %27 : vector<256xf32> to vector<1x256xf32>
    %29 = arith.mulf %25, %25 : vector<16x256xf32>
    %cst_30 = arith.constant dense<0.000000e+00> : vector<256xf32>
    %30 = vector.multi_reduction <add>, %29, %cst_30 [0] : vector<16x256xf32> to vector<256xf32>
    %31 = vector.shape_cast %30 : vector<256xf32> to vector<1x256xf32>
    %c0_i32 = arith.constant 0 : i32
    %32 = vector.broadcast %c0_i32 : i32 to vector<2x1xi32>
    %33 = arith.cmpi eq, %26, %32 : vector<2x1xi32>
    %34 = vector.shape_cast %33 : vector<2x1xi1> to vector<2x1xi1>
    %35 = vector.broadcast %34 : vector<2x1xi1> to vector<2x256xi1>
    %36 = vector.shape_cast %28 : vector<1x256xf32> to vector<1x256xf32>
    %37 = vector.broadcast %36 : vector<1x256xf32> to vector<2x256xf32>
    %38 = vector.shape_cast %31 : vector<1x256xf32> to vector<1x256xf32>
    %39 = vector.broadcast %38 : vector<1x256xf32> to vector<2x256xf32>
    %40 = arith.select %35, %37, %39 : vector<2x256xi1>, vector<2x256xf32>
    %c0_31 = arith.constant 0 : index
    %c0_32 = arith.constant 0 : index
    %41 = vector.load %arg5[%c0_31, %c0_32] : memref<256x8xf32, #tpu.memory_space<vmem>>, vector<256x8xf32>
    %cst_33 = arith.constant dense<0.000000e+00> : vector<2x8xf32>
    %42 = tpu.matmul %40, %41, %cst_33 {dimension_numbers = #tpu.dot_dimension_numbers<[1], [0], [0], [1], [0, 0, 1, 1], [], []>} : vector<2x256xf32>, vector<256x8xf32>, vector<2x8xf32> -> vector<2x8xf32>
    %cst_34 = arith.constant 0.001953125 : f32
    %43 = vector.broadcast %cst_34 : f32 to vector<2x8xf32>
    %44 = arith.mulf %42, %43 : vector<2x8xf32>
    %45 = vector.extract_strided_slice %44 {offsets = [0, 0], sizes = [1, 8], strides = [1, 1]} : vector<2x8xf32> to vector<1x8xf32>
    %46 = vector.extract_strided_slice %44 {offsets = [1, 0], sizes = [1, 8], strides = [1, 1]} : vector<2x8xf32> to vector<1x8xf32>
    %47 = arith.mulf %45, %45 : vector<1x8xf32>
    %48 = arith.subf %46, %47 : vector<1x8xf32>
    %c0_35 = arith.constant 0 : index
    %c0_36 = arith.constant 0 : index
    %49 = vector.load %arg3[%c0_35, %c0_36] : memref<2x8xf32, #tpu.memory_space<vmem>>, vector<1x8xf32>
    %cst_37 = arith.constant 9.99999974E-6 : f32
    %50 = vector.broadcast %cst_37 : f32 to vector<1x8xf32>
    %51 = arith.addf %48, %50 : vector<1x8xf32>
    %52 = math.rsqrt %51 : vector<1x8xf32>
    %53 = arith.mulf %49, %52 : vector<1x8xf32>
    %c1_38 = arith.constant 1 : index
    %c0_39 = arith.constant 0 : index
    %54 = vector.load %arg3[%c1_38, %c0_39] : memref<2x8xf32, #tpu.memory_space<vmem>>, vector<1x8xf32>
    %55 = arith.mulf %45, %53 : vector<1x8xf32>
    %56 = arith.subf %54, %55 : vector<1x8xf32>
    %c0_i32_40 = arith.constant 0 : i32
    %57 = vector.broadcast %c0_i32_40 : i32 to vector<2x1xi32>
    %58 = arith.cmpi eq, %26, %57 : vector<2x1xi32>
    %59 = vector.shape_cast %58 : vector<2x1xi1> to vector<2x1xi1>
    %60 = vector.broadcast %59 : vector<2x1xi1> to vector<2x8xi1>
    %61 = vector.shape_cast %53 : vector<1x8xf32> to vector<1x8xf32>
    %62 = vector.broadcast %61 : vector<1x8xf32> to vector<2x8xf32>
    %63 = vector.shape_cast %56 : vector<1x8xf32> to vector<1x8xf32>
    %64 = vector.broadcast %63 : vector<1x8xf32> to vector<2x8xf32>
    %65 = arith.select %60, %62, %64 : vector<2x8xi1>, vector<2x8xf32>
    %c0_41 = arith.constant 0 : index
    %c0_42 = arith.constant 0 : index
    %66 = vector.load %arg6[%c0_41, %c0_42] : memref<8x256xf32, #tpu.memory_space<vmem>>, vector<8x256xf32>
    %cst_43 = arith.constant dense<0.000000e+00> : vector<2x256xf32>
    %67 = tpu.matmul %65, %66, %cst_43 {dimension_numbers = #tpu.dot_dimension_numbers<[1], [0], [0], [1], [0, 0, 1, 1], [], []>} : vector<2x8xf32>, vector<8x256xf32>, vector<2x256xf32> -> vector<2x256xf32>
    %68 = vector.extract_strided_slice %67 {offsets = [0, 0], sizes = [1, 256], strides = [1, 1]} : vector<2x256xf32> to vector<1x256xf32>
    %69 = vector.broadcast %68 : vector<1x256xf32> to vector<16x256xf32>
    %70 = arith.mulf %25, %69 : vector<16x256xf32>
    %71 = vector.extract_strided_slice %67 {offsets = [1, 0], sizes = [1, 256], strides = [1, 1]} : vector<2x256xf32> to vector<1x256xf32>
    %72 = vector.broadcast %71 : vector<1x256xf32> to vector<16x256xf32>
    %73 = arith.addf %70, %72 : vector<16x256xf32>
    %cst_44 = arith.constant 0.000000e+00 : f32
    %74 = vector.broadcast %cst_44 : f32 to vector<16x256xf32>
    %75 = arith.maximumf %73, %74 : vector<16x256xf32>
    %76 = arith.truncf %75 : vector<16x256xf32> to vector<16x256xbf16>
    %c1_45 = arith.constant 1 : index
    %c0_46 = arith.constant 0 : index
    %c0_47 = arith.constant 0 : index
    %77 = vector.load %arg2[%c1_45, %c0_46, %c0_47] : memref<3x256x128xbf16, #tpu.memory_space<vmem>>, vector<1x256x128xbf16>
    %78 = vector.shape_cast %77 : vector<1x256x128xbf16> to vector<256x128xbf16>
    %cst_48 = arith.constant dense<0.000000e+00> : vector<16x128xf32>
    %79 = tpu.matmul %76, %78, %cst_48 {dimension_numbers = #tpu.dot_dimension_numbers<[1], [0], [0], [1], [0, 0, 1, 1], [], []>} : vector<16x256xbf16>, vector<256x128xbf16>, vector<16x128xf32> -> vector<16x128xf32>
    %80 = vector.shape_cast %79 : vector<16x128xf32> to vector<2x8x128xf32>
    %c0_49 = arith.constant 0 : index
    %c0_50 = arith.constant 0 : index
    %c0_51 = arith.constant 0 : index
    %81 = vector.load %arg11[%c0_49, %c0_50, %c0_51] : memref<2x8x128xf32, #tpu.memory_space<vmem>>, vector<2x8x128xf32>
    tpu.vector_store %arg11[%c0_49, %c0_50, %c0_51], %80 {strides = array<i32>} : memref<2x8x128xf32, #tpu.memory_space<vmem>>, vector<2x8x128xf32>,
    %c0_52 = arith.constant 0 : index
    %c0_53 = arith.constant 0 : index
    %c0_54 = arith.constant 0 : index
    %82 = vector.load %arg2[%c0_52, %c0_53, %c0_54] : memref<3x256x128xbf16, #tpu.memory_space<vmem>>, vector<1x256x128xbf16>
    %83 = vector.shape_cast %82 : vector<1x256x128xbf16> to vector<256x128xbf16>
    %cst_55 = arith.constant dense<0.000000e+00> : vector<16x128xf32>
    %84 = tpu.matmul %76, %83, %cst_55 {dimension_numbers = #tpu.dot_dimension_numbers<[1], [0], [0], [1], [0, 0, 1, 1], [], []>} : vector<16x256xbf16>, vector<256x128xbf16>, vector<16x128xf32> -> vector<16x128xf32>
    %85 = vector.shape_cast %84 : vector<16x128xf32> to vector<2x8x128xf32>
    %c2_56 = arith.constant 2 : index
    %c0_57 = arith.constant 0 : index
    %c0_58 = arith.constant 0 : index
    %86 = vector.load %arg2[%c2_56, %c0_57, %c0_58] : memref<3x256x128xbf16, #tpu.memory_space<vmem>>, vector<1x256x128xbf16>
    %87 = vector.shape_cast %86 : vector<1x256x128xbf16> to vector<256x128xbf16>
    %cst_59 = arith.constant dense<0.000000e+00> : vector<16x128xf32>
    %88 = tpu.matmul %76, %87, %cst_59 {dimension_numbers = #tpu.dot_dimension_numbers<[1], [0], [0], [1], [0, 0, 1, 1], [], []>} : vector<16x256xbf16>, vector<256x128xbf16>, vector<16x128xf32> -> vector<16x128xf32>
    %89 = vector.shape_cast %88 : vector<16x128xf32> to vector<2x8x128xf32>
    %c0_60 = arith.constant 0 : index
    %c1_61 = arith.constant 1 : index
    %c0_62 = arith.constant 0 : index
    %90 = vector.load %arg11[%c0_60, %c1_61, %c0_62] : memref<2x8x128xf32, #tpu.memory_space<vmem>>, vector<2x7x128xf32>
    %91 = vector.extract_strided_slice %85 {offsets = [0, 0, 0], sizes = [2, 7, 128], strides = [1, 1, 1]} : vector<2x8x128xf32> to vector<2x7x128xf32>
    %92 = arith.addf %90, %91 : vector<2x7x128xf32>
    %c0_63 = arith.constant 0 : index
    %c1_64 = arith.constant 1 : index
    %c0_65 = arith.constant 0 : index
    %93 = vector.load %arg11[%c0_63, %c1_64, %c0_65] : memref<2x8x128xf32, #tpu.memory_space<vmem>>, vector<2x7x128xf32>
    tpu.vector_store %arg11[%c0_63, %c1_64, %c0_65], %92 {strides = array<i32>} : memref<2x8x128xf32, #tpu.memory_space<vmem>>, vector<2x7x128xf32>,
    %c0_66 = arith.constant 0 : index
    %c0_67 = arith.constant 0 : index
    %c0_68 = arith.constant 0 : index
    %94 = vector.load %arg11[%c0_66, %c0_67, %c0_68] : memref<2x8x128xf32, #tpu.memory_space<vmem>>, vector<2x7x128xf32>
    %95 = vector.extract_strided_slice %89 {offsets = [0, 1, 0], sizes = [2, 7, 128], strides = [1, 1, 1]} : vector<2x8x128xf32> to vector<2x7x128xf32>
    %96 = arith.addf %94, %95 : vector<2x7x128xf32>
    %c0_69 = arith.constant 0 : index
    %c0_70 = arith.constant 0 : index
    %c0_71 = arith.constant 0 : index
    %97 = vector.load %arg11[%c0_69, %c0_70, %c0_71] : memref<2x8x128xf32, #tpu.memory_space<vmem>>, vector<2x7x128xf32>
    tpu.vector_store %arg11[%c0_69, %c0_70, %c0_71], %96 {strides = array<i32>} : memref<2x8x128xf32, #tpu.memory_space<vmem>>, vector<2x7x128xf32>,
    %c0_72 = arith.constant 0 : index
    %c0_73 = arith.constant 0 : index
    %c0_74 = arith.constant 0 : index
    %98 = vector.load %arg11[%c0_72, %c0_73, %c0_74] : memref<2x8x128xf32, #tpu.memory_space<vmem>>, vector<2x8x128xf32>
    %99 = vector.shape_cast %98 : vector<2x8x128xf32> to vector<16x128xf32>
    %100 = arith.addf %99, %1 : vector<16x128xf32>
    %101 = tpu.iota {dimensions = array<i32: 0>} : vector<2x1xi32>
    %cst_75 = arith.constant dense<0.000000e+00> : vector<128xf32>
    %102 = vector.multi_reduction <add>, %100, %cst_75 [0] : vector<16x128xf32> to vector<128xf32>
    %103 = vector.shape_cast %102 : vector<128xf32> to vector<1x128xf32>
    %104 = arith.mulf %100, %100 : vector<16x128xf32>
    %cst_76 = arith.constant dense<0.000000e+00> : vector<128xf32>
    %105 = vector.multi_reduction <add>, %104, %cst_76 [0] : vector<16x128xf32> to vector<128xf32>
    %106 = vector.shape_cast %105 : vector<128xf32> to vector<1x128xf32>
    %c0_i32_77 = arith.constant 0 : i32
    %107 = vector.broadcast %c0_i32_77 : i32 to vector<2x1xi32>
    %108 = arith.cmpi eq, %101, %107 : vector<2x1xi32>
    %109 = vector.shape_cast %108 : vector<2x1xi1> to vector<2x1xi1>
    %110 = vector.broadcast %109 : vector<2x1xi1> to vector<2x128xi1>
    %111 = vector.shape_cast %103 : vector<1x128xf32> to vector<1x128xf32>
    %112 = vector.broadcast %111 : vector<1x128xf32> to vector<2x128xf32>
    %113 = vector.shape_cast %106 : vector<1x128xf32> to vector<1x128xf32>
    %114 = vector.broadcast %113 : vector<1x128xf32> to vector<2x128xf32>
    %115 = arith.select %110, %112, %114 : vector<2x128xi1>, vector<2x128xf32>
    %c0_78 = arith.constant 0 : index
    %c0_79 = arith.constant 0 : index
    %116 = vector.load %arg7[%c0_78, %c0_79] : memref<128x4xf32, #tpu.memory_space<vmem>>, vector<128x4xf32>
    %cst_80 = arith.constant dense<0.000000e+00> : vector<2x4xf32>
    %117 = tpu.matmul %115, %116, %cst_80 {dimension_numbers = #tpu.dot_dimension_numbers<[1], [0], [0], [1], [0, 0, 1, 1], [], []>} : vector<2x128xf32>, vector<128x4xf32>, vector<2x4xf32> -> vector<2x4xf32>
    %cst_81 = arith.constant 0.001953125 : f32
    %118 = vector.broadcast %cst_81 : f32 to vector<2x4xf32>
    %119 = arith.mulf %117, %118 : vector<2x4xf32>
    %120 = vector.extract_strided_slice %119 {offsets = [0, 0], sizes = [1, 4], strides = [1, 1]} : vector<2x4xf32> to vector<1x4xf32>
    %121 = vector.extract_strided_slice %119 {offsets = [1, 0], sizes = [1, 4], strides = [1, 1]} : vector<2x4xf32> to vector<1x4xf32>
    %122 = arith.mulf %120, %120 : vector<1x4xf32>
    %123 = arith.subf %121, %122 : vector<1x4xf32>
    %c0_82 = arith.constant 0 : index
    %c0_83 = arith.constant 0 : index
    %124 = vector.load %arg4[%c0_82, %c0_83] : memref<2x4xf32, #tpu.memory_space<vmem>>, vector<1x4xf32>
    %cst_84 = arith.constant 9.99999974E-6 : f32
    %125 = vector.broadcast %cst_84 : f32 to vector<1x4xf32>
    %126 = arith.addf %123, %125 : vector<1x4xf32>
    %127 = math.rsqrt %126 : vector<1x4xf32>
    %128 = arith.mulf %124, %127 : vector<1x4xf32>
    %c1_85 = arith.constant 1 : index
    %c0_86 = arith.constant 0 : index
    %129 = vector.load %arg4[%c1_85, %c0_86] : memref<2x4xf32, #tpu.memory_space<vmem>>, vector<1x4xf32>
    %130 = arith.mulf %120, %128 : vector<1x4xf32>
    %131 = arith.subf %129, %130 : vector<1x4xf32>
    %c0_i32_87 = arith.constant 0 : i32
    %132 = vector.broadcast %c0_i32_87 : i32 to vector<2x1xi32>
    %133 = arith.cmpi eq, %101, %132 : vector<2x1xi32>
    %134 = vector.shape_cast %133 : vector<2x1xi1> to vector<2x1xi1>
    %135 = vector.broadcast %134 : vector<2x1xi1> to vector<2x4xi1>
    %136 = vector.shape_cast %128 : vector<1x4xf32> to vector<1x4xf32>
    %137 = vector.broadcast %136 : vector<1x4xf32> to vector<2x4xf32>
    %138 = vector.shape_cast %131 : vector<1x4xf32> to vector<1x4xf32>
    %139 = vector.broadcast %138 : vector<1x4xf32> to vector<2x4xf32>
    %140 = arith.select %135, %137, %139 : vector<2x4xi1>, vector<2x4xf32>
    %c0_88 = arith.constant 0 : index
    %c0_89 = arith.constant 0 : index
    %141 = vector.load %arg8[%c0_88, %c0_89] : memref<4x128xf32, #tpu.memory_space<vmem>>, vector<4x128xf32>
    %cst_90 = arith.constant dense<0.000000e+00> : vector<2x128xf32>
    %142 = tpu.matmul %140, %141, %cst_90 {dimension_numbers = #tpu.dot_dimension_numbers<[1], [0], [0], [1], [0, 0, 1, 1], [], []>} : vector<2x4xf32>, vector<4x128xf32>, vector<2x128xf32> -> vector<2x128xf32>
    %143 = vector.extract_strided_slice %142 {offsets = [0, 0], sizes = [1, 128], strides = [1, 1]} : vector<2x128xf32> to vector<1x128xf32>
    %144 = vector.broadcast %143 : vector<1x128xf32> to vector<16x128xf32>
    %145 = arith.mulf %100, %144 : vector<16x128xf32>
    %146 = vector.extract_strided_slice %142 {offsets = [1, 0], sizes = [1, 128], strides = [1, 1]} : vector<2x128xf32> to vector<1x128xf32>
    %147 = vector.broadcast %146 : vector<1x128xf32> to vector<16x128xf32>
    %148 = arith.addf %145, %147 : vector<16x128xf32>
    %cst_91 = arith.constant 0.000000e+00 : f32
    %149 = vector.broadcast %cst_91 : f32 to vector<16x128xf32>
    %150 = arith.maximumf %148, %149 : vector<16x128xf32>
    %151 = vector.shape_cast %150 : vector<16x128xf32> to vector<2x8x128xf32>
    %c0_92 = arith.constant 0 : index
    %c0_93 = arith.constant 0 : index
    %c0_94 = arith.constant 0 : index
    %152 = vector.load %arg9[%c0_92, %c0_93, %c0_94] : memref<2x8x128xf32, #tpu.memory_space<vmem>>, vector<2x8x128xf32>
    tpu.vector_store %arg9[%c0_92, %c0_93, %c0_94], %151 {strides = array<i32>} : memref<2x8x128xf32, #tpu.memory_space<vmem>>, vector<2x8x128xf32>,
    return
  }
}

</mosaic_0001>

<bundles_post_ra>
// kernel: tile.14
= control target key start
LH: loop header
LB: loop body
LE: loop exit
PB: predicated region body
PF: predicated region fallthrough
CT: control target
= control target key end

     0   :  { %vm55_vm0 = vcmask 1041409   ;;  %vm59_vm1 = vcmask 1042434   ;;  %vm63_vm2 = vcmask 1043459   ;;  %vm67_vm3 = vcmask 1044484   ;;  %s1367_s27 = smov 112   ;;  %s1368_s11 = smov 120   ;;  %s2478_s0 = inlined_call_operand.vmem [shape: f32[32,8,8], index: 0, kind: input, shape index: {}]   ;;  %s2479_s1 = inlined_call_operand.vmem [shape: f32[256,8], index: 1, kind: output, shape index: {}]  }
   0x1   :  { %vm71_vm4 = vcmask 1045509   ;;  %vm75_vm5 = vcmask 1046534   ;;  %vm79_vm6 = vcmask 1047559   ;;  %v1114_v0 = vld [vmem:[%s2478_s0 + $0xe] sm:$0x1]   ;;  %s1369_s30 = smov 104  }
   0x2   :  { %v1115_v1 = vld [vmem:[%s2478_s0 + $0x2d] sm:$0x2]   ;;  %v1097_v10 = vld [vmem:[%s2478_s0 + $0xf] sm:$0x1]   ;;  %v1122_v24 = vld [vmem:[%s2478_s0 + $0x1e] sm:$0x1]  }
   0x3   :  { %v1116_v2 = vld [vmem:[%s2478_s0 + $0x4c] sm:$0x4]   ;;  %v125_v4 = vsel %vm55_vm0, %v1115_v1, %v1114_v0  ;;  %v1098_v11 = vld [vmem:[%s2478_s0 + $0x2e] sm:$0x2]   ;;  %v1123_v25 = vld [vmem:[%s2478_s0 + $0x3d] sm:$0x2]  }
   0x4   :  { %v1117_v3 = vld [vmem:[%s2478_s0 + $0x6b] sm:$0x8]   ;;  %v129_v8 = vsel %vm59_vm1, %v1116_v2, %v125_v4  ;;  %v56_v13 = vsel %vm55_vm0, %v1098_v11, %v1097_v10  ;;  %v1099_v14 = vld [vmem:[%s2478_s0 + $0x4d] sm:$0x4]   ;;  %v1124_v26 = vld [vmem:[%s2478_s0 + $0x5c] sm:$0x4]   ;;  %v159_v29 = vsel %vm55_vm0, %v1123_v25, %v1122_v24 }
   0x5   :  { %v1118_v5 = vld [vmem:[%s2478_s0 + $0x8a] sm:$0x10]   ;;  %v133_v12 = vsel %vm63_vm2, %v1117_v3, %v129_v8  ;;  %v1100_v15 = vld [vmem:[%s2478_s0 + $0x6c] sm:$0x8]   ;;  %v60_v18 = vsel %vm59_vm1, %v1099_v14, %v56_v13  ;;  %v1125_v30 = vld [vmem:[%s2478_s0 + $0x7b] sm:$0x8]   ;;  %v163_v35 = vsel %vm59_vm1, %v1124_v26, %v159_v29 }
   0x6   :  { %v1119_v6 = vld [vmem:[%s2478_s0 + $0xa9] sm:$0x20]   ;;  %v1101_v16 = vld [vmem:[%s2478_s0 + $0x8b] sm:$0x10]   ;;  %v137_v17 = vsel %vm67_vm3, %v1118_v5, %v133_v12  ;;  %v64_v23 = vsel %vm63_vm2, %v1100_v15, %v60_v18  ;;  %v1126_v31 = vld [vmem:[%s2478_s0 + $0x9a] sm:$0x10]   ;;  %v167_v40 = vsel %vm63_vm2, %v1125_v30, %v163_v35 }
   0x7   :  { %v1120_v7 = vld [vmem:[%s2478_s0 + $0xc8] sm:$0x40]   ;;  %v1102_v19 = vld [vmem:[%s2478_s0 + $0xaa] sm:$0x20]   ;;  %v141_v22 = vsel %vm71_vm4, %v1119_v6, %v137_v17  ;;  %v68_v28 = vsel %vm67_vm3, %v1101_v16, %v64_v23  ;;  %v1127_v32 = vld [vmem:[%s2478_s0 + $0xb9] sm:$0x20]   ;;  %v171_v45 = vsel %vm67_vm3, %v1126_v31, %v167_v40 }
   0x8   :  { %v1121_v9 = vld [vmem:[%s2478_s0 + $0xe7] sm:$0x80]   ;;  %v1103_v20 = vld [vmem:[%s2478_s0 + $0xc9] sm:$0x40]   ;;  %v145_v27 = vsel %vm75_vm5, %v1120_v7, %v141_v22  ;;  %v72_v34 = vsel %vm71_vm4, %v1102_v19, %v68_v28  ;;  %v1128_v36 = vld [vmem:[%s2478_s0 + $0xd8] sm:$0x40]   ;;  %v175_v50 = vsel %vm71_vm4, %v1127_v32, %v171_v45 }
   0x9   :  { %v1104_v21 = vld [vmem:[%s2478_s0 + $0xe8] sm:$0x80]   ;;  %v149_v33 = vsel %vm79_vm6, %v1121_v9, %v145_v27  ;;  %v1129_v37 = vld [vmem:[%s2478_s0 + $0xf7] sm:$0x80]   ;;  %v1105_v38 = vld [vmem:[%s2478_s0 + $0x1f] sm:$0x1]   ;;  %v76_v39 = vsel %vm75_vm5, %v1103_v20, %v72_v34  ;;  %v179_v55 = vsel %vm75_vm5, %v1128_v36, %v175_v50 }
   0xa   :  { %150 = vrot.lane.b32.xlu1 %v149_v33, %s1367_s27  ;;  %v1106_v41 = vld [vmem:[%s2478_s0 + $0x3e] sm:$0x2]   ;;  %v80_v44 = vsel %vm79_vm6, %v1104_v21, %v76_v39  ;;  %v1139_v53 = vld [vmem:[%s2478_s0 + $0x1d] sm:$0x1]   ;;  %v183_v61 = vsel %vm79_vm6, %v1129_v37, %v179_v55  ;;  %v1131_v5 = vld [vmem:[%s2478_s0 + $0xd] sm:$0x1]  }
   0xb   :  { %v1107_v42 = vld [vmem:[%s2478_s0 + $0x5d] sm:$0x4]   ;;  %v90_v46 = vsel %vm55_vm0, %v1106_v41, %v1105_v38  ;;  %81 = vrot.lane.b32.xlu0 %v80_v44, %s1368_s11  ;;  %v1140_v54 = vld [vmem:[%s2478_s0 + $0x3c] sm:$0x2]   ;;  %v1132_v6 = vld [vmem:[%s2478_s0 + $0x2c] sm:$0x2]  }
   0xc   :  { %v1108_v43 = vld [vmem:[%s2478_s0 + $0x7c] sm:$0x8]   ;;  %v94_v51 = vsel %vm59_vm1, %v1107_v42, %v90_v46  ;;  %v228_v57 = vsel %vm55_vm0, %v1140_v54, %v1139_v53  ;;  %v1141_v58 = vld [vmem:[%s2478_s0 + $0x5b] sm:$0x4]   ;;  %v1133_v7 = vld [vmem:[%s2478_s0 + $0x4b] sm:$0x4]   ;;  %v194_v10 = vsel %vm55_vm0, %v1132_v6, %v1131_v5 }
   0xd   :  { %v1109_v47 = vld [vmem:[%s2478_s0 + $0x9b] sm:$0x10]   ;;  %v98_v56 = vsel %vm63_vm2, %v1108_v43, %v94_v51  ;;  %v1142_v59 = vld [vmem:[%s2478_s0 + $0x7a] sm:$0x8]   ;;  %v232_v63 = vsel %vm59_vm1, %v1141_v58, %v228_v57  ;;  %v1134_v11 = vld [vmem:[%s2478_s0 + $0x6a] sm:$0x8]   ;;  %v198_v16 = vsel %vm59_vm1, %v1133_v7, %v194_v10 }
   0xe   :  { %v1110_v48 = vld [vmem:[%s2478_s0 + $0xba] sm:$0x20]   ;;  %v1143_v60 = vld [vmem:[%s2478_s0 + $0x99] sm:$0x10]   ;;  %v102_v62 = vsel %vm67_vm3, %v1109_v47, %v98_v56  ;;  %184 = vrot.lane.b32.xlu1 %v183_v61, %s1367_s27  ;;  %v236_v4 = vsel %vm63_vm2, %v1142_v59, %v232_v63  ;;  %v1135_v12 = vld [vmem:[%s2478_s0 + $0x89] sm:$0x10]   ;;  %v202_v20 = vsel %vm63_vm2, %v1134_v11, %v198_v16 }
   0xf   :  { %v1111_v49 = vld [vmem:[%s2478_s0 + $0xd9] sm:$0x40]   ;;  %v1144_v0 = vld [vmem:[%s2478_s0 + $0xb8] sm:$0x20]   ;;  %v106_v3 = vsel %vm71_vm4, %v1110_v48, %v102_v62  ;;  %v240_v9 = vsel %vm67_vm3, %v1143_v60, %v236_v4  ;;  %v1136_v13 = vld [vmem:[%s2478_s0 + $0xa8] sm:$0x20]   ;;  %v206_v25 = vsel %vm67_vm3, %v1135_v12, %v202_v20 }
  0x10   :  { %v1112_v52 = vld [vmem:[%s2478_s0 + $0xf8] sm:$0x80]   ;;  %v1145_v1 = vld [vmem:[%s2478_s0 + $0xd7] sm:$0x40]   ;;  %v110_v8 = vsel %vm75_vm5, %v1111_v49, %v106_v3  ;;  %v244_v15 = vsel %vm71_vm4, %v1144_v0, %v240_v9  ;;  %v1137_v17 = vld [vmem:[%s2478_s0 + $0xc7] sm:$0x40]   ;;  %v210_v30 = vsel %vm71_vm4, %v1136_v13, %v206_v25 }
  0x11   :  { %v1146_v2 = vld [vmem:[%s2478_s0 + $0xf6] sm:$0x80]   ;;  %v114_v14 = vsel %vm79_vm6, %v1112_v52, %v110_v8  ;;  %v1138_v18 = vld [vmem:[%s2478_s0 + $0xe6] sm:$0x80]   ;;  %v248_v19 = vsel %vm75_vm5, %v1145_v1, %v244_v15  ;;  %v1156_v21 = vld [vmem:[%s2478_s0 + $0x1c] sm:$0x1]   ;;  %v214_v35 = vsel %vm75_vm5, %v1137_v17, %v210_v30 }
  0x12   :  { %115 = vrot.lane.b32.xlu0 %v114_v14, %s1368_s11  ;;  %v1157_v22 = vld [vmem:[%s2478_s0 + $0x3b] sm:$0x2]   ;;  %v252_v24 = vsel %vm79_vm6, %v1146_v2, %v248_v19  ;;  %v1148_v34 = vld [vmem:[%s2478_s0 + $0xc] sm:$0x1]   ;;  %v218_v40 = vsel %vm79_vm6, %v1138_v18, %v214_v35  ;;  %v1173_v49 = vld [vmem:[%s2478_s0 + $0x1b] sm:$0x1]  }
  0x13   :  { %v1158_v23 = vld [vmem:[%s2478_s0 + $0x5a] sm:$0x4]   ;;  %v297_v26 = vsel %vm55_vm0, %v1157_v22, %v1156_v21  ;;  %253 = vrot.lane.b32.xlu1 %v252_v24, %s1369_s30  ;;  %v1149_v37 = vld [vmem:[%s2478_s0 + $0x2b] sm:$0x2]   ;;  %v1174_v50 = vld [vmem:[%s2478_s0 + $0x3a] sm:$0x2]  }
  0x14   :  { %v1159_v27 = vld [vmem:[%s2478_s0 + $0x79] sm:$0x8]   ;;  %v301_v31 = vsel %vm59_vm1, %v1158_v23, %v297_v26  ;;  %v1150_v38 = vld [vmem:[%s2478_s0 + $0x4a] sm:$0x4]   ;;  %v263_v42 = vsel %vm55_vm0, %v1149_v37, %v1148_v34  ;;  %v366_v53 = vsel %vm55_vm0, %v1174_v50, %v1173_v49  ;;  %v1175_v54 = vld [vmem:[%s2478_s0 + $0x59] sm:$0x4]  }
  0x15   :  { %v1160_v28 = vld [vmem:[%s2478_s0 + $0x98] sm:$0x10]   ;;  %v305_v36 = vsel %vm63_vm2, %v1159_v27, %v301_v31  ;;  %v1151_v39 = vld [vmem:[%s2478_s0 + $0x69] sm:$0x8]   ;;  %v267_v47 = vsel %vm59_vm1, %v1150_v38, %v263_v42  ;;  %v1176_v55 = vld [vmem:[%s2478_s0 + $0x78] sm:$0x8]   ;;  %v370_v59 = vsel %vm59_vm1, %v1175_v54, %v366_v53 }
  0x16   :  { %v1161_v29 = vld [vmem:[%s2478_s0 + $0xb7] sm:$0x20]   ;;  %v309_v41 = vsel %vm67_vm3, %v1160_v28, %v305_v36  ;;  %v1152_v43 = vld [vmem:[%s2478_s0 + $0x88] sm:$0x10]   ;;  %219 = vrot.lane.b32.xlu0 %v218_v40, %s1369_s30  ;;  %v271_v52 = vsel %vm63_vm2, %v1151_v39, %v267_v47  ;;  %v1177_v56 = vld [vmem:[%s2478_s0 + $0x97] sm:$0x10]   ;;  %v374_v0 = vsel %vm63_vm2, %v1176_v55, %v370_v59 }
  0x17   :  { %v1162_v32 = vld [vmem:[%s2478_s0 + $0xd6] sm:$0x40]   ;;  %v1153_v44 = vld [vmem:[%s2478_s0 + $0xa7] sm:$0x20]   ;;  %v313_v46 = vsel %vm71_vm4, %v1161_v29, %v309_v41  ;;  %v275_v58 = vsel %vm67_vm3, %v1152_v43, %v271_v52  ;;  %v1178_v60 = vld [vmem:[%s2478_s0 + $0xb6] sm:$0x20]   ;;  %v378_v5 = vsel %vm67_vm3, %v1177_v56, %v374_v0 }
  0x18   :  { %v1163_v33 = vld [vmem:[%s2478_s0 + $0xf5] sm:$0x80]   ;;  %v1154_v45 = vld [vmem:[%s2478_s0 + $0xc6] sm:$0x40]   ;;  %v317_v51 = vsel %vm75_vm5, %v1162_v32, %v313_v46  ;;  %v1179_v61 = vld [vmem:[%s2478_s0 + $0xd5] sm:$0x40]   ;;  %v279_v63 = vsel %vm71_vm4, %v1153_v44, %v275_v58  ;;  %v382_v11 = vsel %vm71_vm4, %v1178_v60, %v378_v5 }
  0x19   :  { %v1155_v48 = vld [vmem:[%s2478_s0 + $0xe5] sm:$0x80]   ;;  %v321_v57 = vsel %vm79_vm6, %v1163_v33, %v317_v51  ;;  %v1180_v62 = vld [vmem:[%s2478_s0 + $0xf4] sm:$0x80]   ;;  %s1370_s8 = smov 96   ;;  %v283_v4 = vsel %vm75_vm5, %v1154_v45, %v279_v63  ;;  %v386_v15 = vsel %vm75_vm5, %v1179_v61, %v382_v11  ;;  %s1372_s17 = smov 80  }
  0x1a   :  { %322 = vrot.lane.b32.xlu1 %v321_v57, %s1370_s8  ;;  %v1165_v1 = vld [vmem:[%s2478_s0 + $0xb] sm:$0x1]   ;;  %v287_v10 = vsel %vm79_vm6, %v1155_v48, %v283_v4  ;;  %v1190_v17 = vld [vmem:[%s2478_s0 + $0x1a] sm:$0x1]   ;;  %v390_v20 = vsel %vm79_vm6, %v1180_v62, %v386_v15  ;;  %v1182_v30 = vld [vmem:[%s2478_s0 + $0xa] sm:$0x1]  }
  0x1b   :  { %v1166_v2 = vld [vmem:[%s2478_s0 + $0x2a] sm:$0x2]   ;;  %288 = vrot.lane.b32.xlu0 %v287_v10, %s1370_s8  ;;  %v1191_v18 = vld [vmem:[%s2478_s0 + $0x39] sm:$0x2]   ;;  %s1371_s8 = smov 88   ;;  %s1374_s24 = smov 64  }
  0x1c   :  { %v1167_v3 = vld [vmem:[%s2478_s0 + $0x49] sm:$0x4]   ;;  %v332_v6 = vsel %vm55_vm0, %v1166_v2, %v1165_v1  ;;  %v1192_v19 = vld [vmem:[%s2478_s0 + $0x58] sm:$0x4]   ;;  %v435_v22 = vsel %vm55_vm0, %v1191_v18, %v1190_v17  ;;  %v1183_v33 = vld [vmem:[%s2478_s0 + $0x29] sm:$0x2]  }
  0x1d   :  { %v1168_v7 = vld [vmem:[%s2478_s0 + $0x68] sm:$0x8]   ;;  %v336_v12 = vsel %vm59_vm1, %v1167_v3, %v332_v6  ;;  %v1193_v23 = vld [vmem:[%s2478_s0 + $0x77] sm:$0x8]   ;;  %v439_v27 = vsel %vm59_vm1, %v1192_v19, %v435_v22  ;;  %v1184_v34 = vld [vmem:[%s2478_s0 + $0x48] sm:$0x4]   ;;  %v401_v38 = vsel %vm55_vm0, %v1183_v33, %v1182_v30 }
  0x1e   :  { %v1169_v8 = vld [vmem:[%s2478_s0 + $0x87] sm:$0x10]   ;;  %v340_v16 = vsel %vm63_vm2, %v1168_v7, %v336_v12  ;;  %v1194_v24 = vld [vmem:[%s2478_s0 + $0x96] sm:$0x10]   ;;  %391 = vrot.lane.b32.xlu1 %v390_v20, %s1371_s8  ;;  %v443_v32 = vsel %vm63_vm2, %v1193_v23, %v439_v27  ;;  %v1185_v35 = vld [vmem:[%s2478_s0 + $0x67] sm:$0x8]   ;;  %v405_v43 = vsel %vm59_vm1, %v1184_v34, %v401_v38 }
  0x1f   :  { %v1170_v9 = vld [vmem:[%s2478_s0 + $0xa6] sm:$0x20]   ;;  %v344_v21 = vsel %vm67_vm3, %v1169_v8, %v340_v16  ;;  %v1195_v25 = vld [vmem:[%s2478_s0 + $0xb5] sm:$0x20]   ;;  %v447_v37 = vsel %vm67_vm3, %v1194_v24, %v443_v32  ;;  %v1186_v39 = vld [vmem:[%s2478_s0 + $0x86] sm:$0x10]   ;;  %v409_v48 = vsel %vm63_vm2, %v1185_v35, %v405_v43 }
  0x20   :  { %v1171_v13 = vld [vmem:[%s2478_s0 + $0xc5] sm:$0x40]   ;;  %v348_v26 = vsel %vm71_vm4, %v1170_v9, %v344_v21  ;;  %v1196_v28 = vld [vmem:[%s2478_s0 + $0xd4] sm:$0x40]   ;;  %v1187_v40 = vld [vmem:[%s2478_s0 + $0xa5] sm:$0x20]   ;;  %v451_v42 = vsel %vm71_vm4, %v1195_v25, %v447_v37  ;;  %v413_v54 = vsel %vm67_vm3, %v1186_v39, %v409_v48 }
  0x21   :  { %v1172_v14 = vld [vmem:[%s2478_s0 + $0xe4] sm:$0x80]   ;;  %v1197_v29 = vld [vmem:[%s2478_s0 + $0xf3] sm:$0x80]   ;;  %v352_v31 = vsel %vm75_vm5, %v1171_v13, %v348_v26  ;;  %v1188_v41 = vld [vmem:[%s2478_s0 + $0xc4] sm:$0x40]   ;;  %v455_v47 = vsel %vm75_vm5, %v1196_v28, %v451_v42  ;;  %v417_v59 = vsel %vm71_vm4, %v1187_v40, %v413_v54 }
  0x22   :  { %v356_v36 = vsel %vm79_vm6, %v1172_v14, %v352_v31  ;;  %v1189_v44 = vld [vmem:[%s2478_s0 + $0xe3] sm:$0x80]   ;;  %v1207_v45 = vld [vmem:[%s2478_s0 + $0x19] sm:$0x1]   ;;  %v459_v53 = vsel %vm79_vm6, %v1197_v29, %v455_v47  ;;  %v1199_v61 = vld [vmem:[%s2478_s0 + $0x9] sm:$0x1]   ;;  %v421_v0 = vsel %vm75_vm5, %v1188_v41, %v417_v59 }
  0x23   :  { %357 = vrot.lane.b32.xlu0 %v356_v36, %s1371_s8  ;;  %v1208_v46 = vld [vmem:[%s2478_s0 + $0x38] sm:$0x2]   ;;  %460 = vrot.lane.b32.xlu1 %v459_v53, %s1372_s17  ;;  %v1200_v62 = vld [vmem:[%s2478_s0 + $0x28] sm:$0x2]   ;;  %v425_v6 = vsel %vm79_vm6, %v1189_v44, %v421_v0  ;;  %s1376_s3 = smov 48   ;;  %s1378_s12 = smov 32  }
  0x24   :  { %v504_v49 = vsel %vm55_vm0, %v1208_v46, %v1207_v45  ;;  %v1209_v50 = vld [vmem:[%s2478_s0 + $0x57] sm:$0x4]   ;;  %v1201_v63 = vld [vmem:[%s2478_s0 + $0x47] sm:$0x4]   ;;  %v470_v2 = vsel %vm55_vm0, %v1200_v62, %v1199_v61  ;;  %v1224_v13 = vld [vmem:[%s2478_s0 + $0x18] sm:$0x1]  }
  0x25   :  { %v1210_v51 = vld [vmem:[%s2478_s0 + $0x76] sm:$0x8]   ;;  %v508_v55 = vsel %vm59_vm1, %v1209_v50, %v504_v49  ;;  %v1202_v3 = vld [vmem:[%s2478_s0 + $0x66] sm:$0x8]   ;;  %v474_v8 = vsel %vm59_vm1, %v1201_v63, %v470_v2  ;;  %v1225_v14 = vld [vmem:[%s2478_s0 + $0x37] sm:$0x2]  }
  0x26   :  { %v1211_v52 = vld [vmem:[%s2478_s0 + $0x95] sm:$0x10]   ;;  %v512_v60 = vsel %vm63_vm2, %v1210_v51, %v508_v55  ;;  %v1203_v4 = vld [vmem:[%s2478_s0 + $0x85] sm:$0x10]   ;;  %v478_v12 = vsel %vm63_vm2, %v1202_v3, %v474_v8  ;;  %v1226_v15 = vld [vmem:[%s2478_s0 + $0x56] sm:$0x4]   ;;  %v573_v18 = vsel %vm55_vm0, %v1225_v14, %v1224_v13 }
  0x27   :  { %v1212_v56 = vld [vmem:[%s2478_s0 + $0xb4] sm:$0x20]   ;;  %v516_v1 = vsel %vm67_vm3, %v1211_v52, %v512_v60  ;;  %v1204_v5 = vld [vmem:[%s2478_s0 + $0xa4] sm:$0x20]   ;;  %426 = vrot.lane.b32.xlu0 %v425_v6, %s1372_s17  ;;  %v482_v17 = vsel %vm67_vm3, %v1203_v4, %v478_v12  ;;  %v1227_v19 = vld [vmem:[%s2478_s0 + $0x75] sm:$0x8]   ;;  %v577_v23 = vsel %vm59_vm1, %v1226_v15, %v573_v18 }
  0x28   :  { %v1213_v57 = vld [vmem:[%s2478_s0 + $0xd3] sm:$0x40]   ;;  %v520_v7 = vsel %vm71_vm4, %v1212_v56, %v516_v1  ;;  %v1205_v9 = vld [vmem:[%s2478_s0 + $0xc3] sm:$0x40]   ;;  %v1228_v20 = vld [vmem:[%s2478_s0 + $0x94] sm:$0x10]   ;;  %v486_v22 = vsel %vm71_vm4, %v1204_v5, %v482_v17  ;;  %v581_v28 = vsel %vm63_vm2, %v1227_v19, %v577_v23 }
  0x29   :  { %v1214_v58 = vld [vmem:[%s2478_s0 + $0xf2] sm:$0x80]   ;;  %v1206_v10 = vld [vmem:[%s2478_s0 + $0xe2] sm:$0x80]   ;;  %v524_v11 = vsel %vm75_vm5, %v1213_v57, %v520_v7  ;;  %v1229_v21 = vld [vmem:[%s2478_s0 + $0xb3] sm:$0x20]   ;;  %v490_v27 = vsel %vm75_vm5, %v1205_v9, %v486_v22  ;;  %v585_v33 = vsel %vm67_vm3, %v1228_v20, %v581_v28 }
  0x2a   :  { %v528_v16 = vsel %vm79_vm6, %v1214_v58, %v524_v11  ;;  %s1373_s17 = smov 72   ;;  %v1230_v24 = vld [vmem:[%s2478_s0 + $0xd2] sm:$0x40]   ;;  %v1216_v26 = vld [vmem:[%s2478_s0 + $0x8] sm:$0x1]   ;;  %v494_v32 = vsel %vm79_vm6, %v1206_v10, %v490_v27  ;;  %v589_v38 = vsel %vm71_vm4, %v1229_v21, %v585_v33  ;;  %s1380_s19 = smov 16  }
  0x2b   :  { %529 = vrot.lane.b32.xlu1 %v528_v16, %s1373_s17  ;;  %v1231_v25 = vld [vmem:[%s2478_s0 + $0xf1] sm:$0x80]   ;;  %v1217_v29 = vld [vmem:[%s2478_s0 + $0x27] sm:$0x2]   ;;  %495 = vrot.lane.b32.xlu0 %v494_v32, %s1373_s17  ;;  %v593_v43 = vsel %vm75_vm5, %v1230_v24, %v589_v38  ;;  %s2_s7 = smov 3  ;;  %s4_s8 = smov 12 }
  0x2c   :  { %v1218_v30 = vld [vmem:[%s2478_s0 + $0x46] sm:$0x4]   ;;  %v539_v34 = vsel %vm55_vm0, %v1217_v29, %v1216_v26  ;;  %v1241_v41 = vld [vmem:[%s2478_s0 + $0x17] sm:$0x1]   ;;  %v597_v49 = vsel %vm79_vm6, %v1231_v25, %v593_v43  ;;  %v1233_v57 = vld [vmem:[%s2478_s0 + $0x7] sm:$0x1]  }
  0x2d   :  { %v1219_v31 = vld [vmem:[%s2478_s0 + $0x65] sm:$0x8]   ;;  %v543_v39 = vsel %vm59_vm1, %v1218_v30, %v539_v34  ;;  %v1242_v42 = vld [vmem:[%s2478_s0 + $0x36] sm:$0x2]   ;;  %v1234_v58 = vld [vmem:[%s2478_s0 + $0x26] sm:$0x2]  }
  0x2e   :  { %v1220_v35 = vld [vmem:[%s2478_s0 + $0x84] sm:$0x10]   ;;  %v547_v44 = vsel %vm63_vm2, %v1219_v31, %v543_v39  ;;  %v642_v45 = vsel %vm55_vm0, %v1242_v42, %v1241_v41  ;;  %v1243_v46 = vld [vmem:[%s2478_s0 + $0x55] sm:$0x4]   ;;  %v1235_v59 = vld [vmem:[%s2478_s0 + $0x45] sm:$0x4]   ;;  %v608_v62 = vsel %vm55_vm0, %v1234_v58, %v1233_v57 }
  0x2f   :  { %v1221_v36 = vld [vmem:[%s2478_s0 + $0xa3] sm:$0x20]   ;;  %v1244_v47 = vld [vmem:[%s2478_s0 + $0x74] sm:$0x8]   ;;  %v551_v50 = vsel %vm67_vm3, %v1220_v35, %v547_v44  ;;  %v646_v51 = vsel %vm59_vm1, %v1243_v46, %v642_v45  ;;  %598 = vrot.lane.b32.xlu1 %v597_v49, %s1374_s24  ;;  %v1236_v63 = vld [vmem:[%s2478_s0 + $0x64] sm:$0x8]   ;;  %v612_v4 = vsel %vm59_vm1, %v1235_v59, %v608_v62 }
  0x30   :  { %v1222_v37 = vld [vmem:[%s2478_s0 + $0xc2] sm:$0x40]   ;;  %v1245_v48 = vld [vmem:[%s2478_s0 + $0x93] sm:$0x10]   ;;  %v555_v55 = vsel %vm71_vm4, %v1221_v36, %v551_v50  ;;  %v650_v56 = vsel %vm63_vm2, %v1244_v47, %v646_v51  ;;  %v1237_v0 = vld [vmem:[%s2478_s0 + $0x83] sm:$0x10]   ;;  %v616_v8 = vsel %vm63_vm2, %v1236_v63, %v612_v4 }
  0x31   :  { %v1223_v40 = vld [vmem:[%s2478_s0 + $0xe1] sm:$0x80]   ;;  %v1246_v52 = vld [vmem:[%s2478_s0 + $0xb2] sm:$0x20]   ;;  %v559_v60 = vsel %vm75_vm5, %v1222_v37, %v555_v55  ;;  %v654_v61 = vsel %vm67_vm3, %v1245_v48, %v650_v56  ;;  %v1238_v1 = vld [vmem:[%s2478_s0 + $0xa2] sm:$0x20]   ;;  %v620_v13 = vsel %vm67_vm3, %v1237_v0, %v616_v8 }
  0x32   :  { %v1247_v53 = vld [vmem:[%s2478_s0 + $0xd1] sm:$0x40]   ;;  %v563_v2 = vsel %vm79_vm6, %v1223_v40, %v559_v60  ;;  %v658_v3 = vsel %vm71_vm4, %v1246_v52, %v654_v61  ;;  %v1239_v5 = vld [vmem:[%s2478_s0 + $0xc1] sm:$0x40]   ;;  %v1258_v9 = vld [vmem:[%s2478_s0 + $0x16] sm:$0x1]   ;;  %v624_v18 = vsel %vm71_vm4, %v1238_v1, %v620_v13 }
  0x33   :  { %v1248_v54 = vld [vmem:[%s2478_s0 + $0xf0] sm:$0x80]   ;;  %v1240_v6 = vld [vmem:[%s2478_s0 + $0xe0] sm:$0x80]   ;;  %564 = vrot.lane.b32.xlu0 %v563_v2, %s1374_s24  ;;  %v662_v7 = vsel %vm75_vm5, %v1247_v53, %v658_v3  ;;  %v1259_v10 = vld [vmem:[%s2478_s0 + $0x35] sm:$0x2]   ;;  %v628_v23 = vsel %vm75_vm5, %v1239_v5, %v624_v18 }
  0x34   :  { %v1260_v11 = vld [vmem:[%s2478_s0 + $0x54] sm:$0x4]   ;;  %v666_v12 = vsel %vm79_vm6, %v1248_v54, %v662_v7  ;;  %v711_v14 = vsel %vm55_vm0, %v1259_v10, %v1258_v9  ;;  %s1375_s24 = smov 56   ;;  %v1250_v22 = vld [vmem:[%s2478_s0 + $0x6] sm:$0x1]   ;;  %v632_v28 = vsel %vm79_vm6, %v1240_v6, %v628_v23  ;;  %vm6_vm7 = vcmask 1043458  }
  0x35   :  { %v1261_v15 = vld [vmem:[%s2478_s0 + $0x73] sm:$0x8]   ;;  %667 = vrot.lane.b32.xlu1 %v666_v12, %s1375_s24  ;;  %v715_v19 = vsel %vm59_vm1, %v1260_v11, %v711_v14  ;;  %v1251_v25 = vld [vmem:[%s2478_s0 + $0x25] sm:$0x2]   ;;  %v1275_v37 = vld [vmem:[%s2478_s0 + $0x15] sm:$0x1]  }
  0x36   :  { %v1262_v16 = vld [vmem:[%s2478_s0 + $0x92] sm:$0x10]   ;;  %v719_v24 = vsel %vm63_vm2, %v1261_v15, %v715_v19  ;;  %v1252_v26 = vld [vmem:[%s2478_s0 + $0x44] sm:$0x4]   ;;  %v677_v30 = vsel %vm55_vm0, %v1251_v25, %v1250_v22  ;;  %v1276_v38 = vld [vmem:[%s2478_s0 + $0x34] sm:$0x2]  }
  0x37   :  { %v1263_v17 = vld [vmem:[%s2478_s0 + $0xb1] sm:$0x20]   ;;  %v1253_v27 = vld [vmem:[%s2478_s0 + $0x63] sm:$0x8]   ;;  %v723_v29 = vsel %vm67_vm3, %v1262_v16, %v719_v24  ;;  %633 = vrot.lane.b32.xlu0 %v632_v28, %s1375_s24  ;;  %v681_v35 = vsel %vm59_vm1, %v1252_v26, %v677_v30  ;;  %v780_v41 = vsel %vm55_vm0, %v1276_v38, %v1275_v37  ;;  %v1277_v42 = vld [vmem:[%s2478_s0 + $0x53] sm:$0x4]  }
  0x38   :  { %v1264_v20 = vld [vmem:[%s2478_s0 + $0xd0] sm:$0x40]   ;;  %v1254_v31 = vld [vmem:[%s2478_s0 + $0x82] sm:$0x10]   ;;  %v727_v34 = vsel %vm71_vm4, %v1263_v17, %v723_v29  ;;  %v685_v40 = vsel %vm63_vm2, %v1253_v27, %v681_v35  ;;  %v1278_v43 = vld [vmem:[%s2478_s0 + $0x72] sm:$0x8]   ;;  %v784_v47 = vsel %vm59_vm1, %v1277_v42, %v780_v41 }
  0x39   :  { %v1265_v21 = vld [vmem:[%s2478_s0 + $0xef] sm:$0x80]   ;;  %v1255_v32 = vld [vmem:[%s2478_s0 + $0xa1] sm:$0x20]   ;;  %v731_v39 = vsel %vm75_vm5, %v1264_v20, %v727_v34  ;;  %v1279_v44 = vld [vmem:[%s2478_s0 + $0x91] sm:$0x10]   ;;  %v689_v46 = vsel %vm67_vm3, %v1254_v31, %v685_v40  ;;  %v788_v52 = vsel %vm63_vm2, %v1278_v43, %v784_v47 }
  0x3a   :  { %v1256_v33 = vld [vmem:[%s2478_s0 + $0xc0] sm:$0x40]   ;;  %v735_v45 = vsel %vm79_vm6, %v1265_v21, %v731_v39  ;;  %v1280_v48 = vld [vmem:[%s2478_s0 + $0xb0] sm:$0x20]   ;;  %v693_v51 = vsel %vm71_vm4, %v1255_v32, %v689_v46  ;;  %v1267_v53 = vld [vmem:[%s2478_s0 + $0x5] sm:$0x1]   ;;  %v792_v57 = vsel %vm67_vm3, %v1279_v44, %v788_v52 }
  0x3b   :  { %v1257_v36 = vld [vmem:[%s2478_s0 + $0xdf] sm:$0x80]   ;;  %v1281_v49 = vld [vmem:[%s2478_s0 + $0xcf] sm:$0x40]   ;;  %736 = vrot.lane.b32.xlu1 %v735_v45, %s1376_s3  ;;  %v1268_v54 = vld [vmem:[%s2478_s0 + $0x24] sm:$0x2]   ;;  %v697_v56 = vsel %vm75_vm5, %v1256_v33, %v693_v51  ;;  %v796_v63 = vsel %vm71_vm4, %v1280_v48, %v792_v57 }
  0x3c   :  { %v1282_v50 = vld [vmem:[%s2478_s0 + $0xee] sm:$0x80]   ;;  %v1269_v55 = vld [vmem:[%s2478_s0 + $0x43] sm:$0x4]   ;;  %v746_v58 = vsel %vm55_vm0, %v1268_v54, %v1267_v53  ;;  %v701_v62 = vsel %vm79_vm6, %v1257_v36, %v697_v56  ;;  %v800_v3 = vsel %vm75_vm5, %v1281_v49, %v796_v63  ;;  %v1292_v5 = vld [vmem:[%s2478_s0 + $0x14] sm:$0x1]  }
  0x3d   :  { %v1270_v59 = vld [vmem:[%s2478_s0 + $0x62] sm:$0x8]   ;;  %v750_v0 = vsel %vm59_vm1, %v1269_v55, %v746_v58  ;;  %702 = vrot.lane.b32.xlu0 %v701_v62, %s1376_s3  ;;  %v1293_v6 = vld [vmem:[%s2478_s0 + $0x33] sm:$0x2]   ;;  %v804_v8 = vsel %vm79_vm6, %v1282_v50, %v800_v3  ;;  %s1377_s3 = smov 40   ;;  %s8_s9 = smov 48 }
  0x3e   :  { %v1271_v60 = vld [vmem:[%s2478_s0 + $0x81] sm:$0x10]   ;;  %v754_v4 = vsel %vm63_vm2, %v1270_v59, %v750_v0  ;;  %v1294_v7 = vld [vmem:[%s2478_s0 + $0x52] sm:$0x4]   ;;  %v849_v10 = vsel %vm55_vm0, %v1293_v6, %v1292_v5  ;;  %v1284_v18 = vld [vmem:[%s2478_s0 + $0x4] sm:$0x1]  }
  0x3f   :  { %v1272_v61 = vld [vmem:[%s2478_s0 + $0xa0] sm:$0x20]   ;;  %v758_v9 = vsel %vm67_vm3, %v1271_v60, %v754_v4  ;;  %v1295_v11 = vld [vmem:[%s2478_s0 + $0x71] sm:$0x8]   ;;  %805 = vrot.lane.b32.xlu1 %v804_v8, %s1377_s3  ;;  %v853_v15 = vsel %vm59_vm1, %v1294_v7, %v849_v10  ;;  %v1285_v21 = vld [vmem:[%s2478_s0 + $0x23] sm:$0x2]  }
  0x40   :  { %v1273_v1 = vld [vmem:[%s2478_s0 + $0xbf] sm:$0x40]   ;;  %v1296_v12 = vld [vmem:[%s2478_s0 + $0x90] sm:$0x10]   ;;  %v762_v14 = vsel %vm71_vm4, %v1272_v61, %v758_v9  ;;  %v857_v20 = vsel %vm63_vm2, %v1295_v11, %v853_v15  ;;  %v1286_v22 = vld [vmem:[%s2478_s0 + $0x42] sm:$0x4]   ;;  %v815_v26 = vsel %vm55_vm0, %v1285_v21, %v1284_v18 }
  0x41   :  { %v1274_v2 = vld [vmem:[%s2478_s0 + $0xde] sm:$0x80]   ;;  %v1297_v13 = vld [vmem:[%s2478_s0 + $0xaf] sm:$0x20]   ;;  %v766_v19 = vsel %vm75_vm5, %v1273_v1, %v762_v14  ;;  %v1287_v23 = vld [vmem:[%s2478_s0 + $0x61] sm:$0x8]   ;;  %v861_v25 = vsel %vm67_vm3, %v1296_v12, %v857_v20  ;;  %v819_v31 = vsel %vm59_vm1, %v1286_v22, %v815_v26 }
  0x42   :  { %v1298_v16 = vld [vmem:[%s2478_s0 + $0xce] sm:$0x40]   ;;  %v770_v24 = vsel %vm79_vm6, %v1274_v2, %v766_v19  ;;  %v1288_v27 = vld [vmem:[%s2478_s0 + $0x80] sm:$0x10]   ;;  %v865_v30 = vsel %vm71_vm4, %v1297_v13, %v861_v25  ;;  %v1309_v33 = vld [vmem:[%s2478_s0 + $0x13] sm:$0x1]   ;;  %v823_v36 = vsel %vm63_vm2, %v1287_v23, %v819_v31 }
  0x43   :  { %v1299_v17 = vld [vmem:[%s2478_s0 + $0xed] sm:$0x80]   ;;  %v1289_v28 = vld [vmem:[%s2478_s0 + $0x9f] sm:$0x20]   ;;  %771 = vrot.lane.b32.xlu0 %v770_v24, %s1377_s3  ;;  %v1310_v34 = vld [vmem:[%s2478_s0 + $0x32] sm:$0x2]   ;;  %v869_v35 = vsel %vm75_vm5, %v1298_v16, %v865_v30  ;;  %v827_v42 = vsel %vm67_vm3, %v1288_v27, %v823_v36 }
  0x44   :  { %v1290_v29 = vld [vmem:[%s2478_s0 + $0xbe] sm:$0x40]   ;;  %v918_v37 = vsel %vm55_vm0, %v1310_v34, %v1309_v33  ;;  %v1311_v38 = vld [vmem:[%s2478_s0 + $0x51] sm:$0x4]   ;;  %v873_v41 = vsel %vm79_vm6, %v1299_v17, %v869_v35  ;;  %v831_v47 = vsel %vm71_vm4, %v1289_v28, %v827_v42  ;;  %v1301_v49 = vld [vmem:[%s2478_s0 + $0x3] sm:$0x1]  }
  0x45   :  { %v1291_v32 = vld [vmem:[%s2478_s0 + $0xdd] sm:$0x80]   ;;  %v1312_v39 = vld [vmem:[%s2478_s0 + $0x70] sm:$0x8]   ;;  %v922_v43 = vsel %vm59_vm1, %v1311_v38, %v918_v37  ;;  %874 = vrot.lane.b32.xlu1 %v873_v41, %s1378_s12  ;;  %v1302_v50 = vld [vmem:[%s2478_s0 + $0x22] sm:$0x2]   ;;  %v835_v52 = vsel %vm75_vm5, %v1290_v29, %v831_v47 }
  0x46   :  { %v1313_v40 = vld [vmem:[%s2478_s0 + $0x8f] sm:$0x10]   ;;  %v926_v48 = vsel %vm63_vm2, %v1312_v39, %v922_v43  ;;  %v1303_v51 = vld [vmem:[%s2478_s0 + $0x41] sm:$0x4]   ;;  %v884_v54 = vsel %vm55_vm0, %v1302_v50, %v1301_v49  ;;  %v839_v58 = vsel %vm79_vm6, %v1291_v32, %v835_v52  ;;  %v1326_v1 = vld [vmem:[%s2478_s0 + $0x12] sm:$0x1]  }
  0x47   :  { %v1314_v44 = vld [vmem:[%s2478_s0 + $0xae] sm:$0x20]   ;;  %v930_v53 = vsel %vm67_vm3, %v1313_v40, %v926_v48  ;;  %v1304_v55 = vld [vmem:[%s2478_s0 + $0x60] sm:$0x8]   ;;  %v888_v60 = vsel %vm59_vm1, %v1303_v51, %v884_v54  ;;  %840 = vrot.lane.b32.xlu0 %v839_v58, %s1378_s12  ;;  %v1327_v2 = vld [vmem:[%s2478_s0 + $0x31] sm:$0x2]  }
  0x48   :  { %v1315_v45 = vld [vmem:[%s2478_s0 + $0xcd] sm:$0x40]   ;;  %v1305_v56 = vld [vmem:[%s2478_s0 + $0x7f] sm:$0x10]   ;;  %v934_v59 = vsel %vm71_vm4, %v1314_v44, %v930_v53  ;;  %v892_v0 = vsel %vm63_vm2, %v1304_v55, %v888_v60  ;;  %v1328_v3 = vld [vmem:[%s2478_s0 + $0x50] sm:$0x4]   ;;  %v987_v6 = vsel %vm55_vm0, %v1327_v2, %v1326_v1 }
  0x49   :  { %v1316_v46 = vld [vmem:[%s2478_s0 + $0xec] sm:$0x80]   ;;  %v1306_v57 = vld [vmem:[%s2478_s0 + $0x9e] sm:$0x20]   ;;  %v938_v63 = vsel %vm75_vm5, %v1315_v45, %v934_v59  ;;  %v896_v5 = vsel %vm67_vm3, %v1305_v56, %v892_v0  ;;  %v1329_v7 = vld [vmem:[%s2478_s0 + $0x6f] sm:$0x8]   ;;  %v991_v11 = vsel %vm59_vm1, %v1328_v3, %v987_v6 }
  0x4a   :  { %v1307_v61 = vld [vmem:[%s2478_s0 + $0xbd] sm:$0x40]   ;;  %v942_v4 = vsel %vm79_vm6, %v1316_v46, %v938_v63  ;;  %v1330_v8 = vld [vmem:[%s2478_s0 + $0x8e] sm:$0x10]   ;;  %s1379_s12 = smov 24   ;;  %v900_v10 = vsel %vm71_vm4, %v1306_v57, %v896_v5  ;;  %v995_v16 = vsel %vm63_vm2, %v1329_v7, %v991_v11  ;;  %vm10_vm8 = vcmask 1045508  }
  0x4b   :  { %v1308_v62 = vld [vmem:[%s2478_s0 + $0xdc] sm:$0x80]   ;;  %v1331_v9 = vld [vmem:[%s2478_s0 + $0xad] sm:$0x20]   ;;  %943 = vrot.lane.b32.xlu1 %v942_v4, %s1379_s12  ;;  %v1318_v14 = vld [vmem:[%s2478_s0 + $0x2] sm:$0x1]   ;;  %v904_v15 = vsel %vm75_vm5, %v1307_v61, %v900_v10  ;;  %v999_v21 = vsel %vm67_vm3, %v1330_v8, %v995_v16 }
  0x4c   :  { %v1332_v12 = vld [vmem:[%s2478_s0 + $0xcc] sm:$0x40]   ;;  %v1319_v17 = vld [vmem:[%s2478_s0 + $0x21] sm:$0x2]   ;;  %v908_v20 = vsel %vm79_vm6, %v1308_v62, %v904_v15  ;;  %v1003_v26 = vsel %vm71_vm4, %v1331_v9, %v999_v21  ;;  %v1343_v29 = vld [vmem:[%s2478_s0 + $0x11] sm:$0x1]  }
  0x4d   :  { %v1333_v13 = vld [vmem:[%s2478_s0 + $0xeb] sm:$0x80]   ;;  %v1320_v18 = vld [vmem:[%s2478_s0 + $0x40] sm:$0x4]   ;;  %v953_v22 = vsel %vm55_vm0, %v1319_v17, %v1318_v14  ;;  %909 = vrot.lane.b32.xlu0 %v908_v20, %s1379_s12  ;;  %v1344_v30 = vld [vmem:[%s2478_s0 + $0x30] sm:$0x2]   ;;  %v1007_v31 = vsel %vm75_vm5, %v1332_v12, %v1003_v26 }
  0x4e   :  { %v1321_v19 = vld [vmem:[%s2478_s0 + $0x5f] sm:$0x8]   ;;  %v957_v27 = vsel %vm59_vm1, %v1320_v18, %v953_v22  ;;  %v1056_v33 = vsel %vm55_vm0, %v1344_v30, %v1343_v29  ;;  %v1345_v34 = vld [vmem:[%s2478_s0 + $0x4f] sm:$0x4]   ;;  %v1011_v37 = vsel %vm79_vm6, %v1333_v13, %v1007_v31  ;;  %v1335_v45 = vld [vmem:[%s2478_s0 + $0x1] sm:$0x1]  }
  0x4f   :  { %v1322_v23 = vld [vmem:[%s2478_s0 + $0x7e] sm:$0x10]   ;;  %v961_v32 = vsel %vm63_vm2, %v1321_v19, %v957_v27  ;;  %v1346_v35 = vld [vmem:[%s2478_s0 + $0x6e] sm:$0x8]   ;;  %v1060_v39 = vsel %vm59_vm1, %v1345_v34, %v1056_v33  ;;  %1012 = vrot.lane.b32.xlu1 %v1011_v37, %s1380_s19  ;;  %v1336_v46 = vld [vmem:[%s2478_s0 + $0x20] sm:$0x2]  }
  0x50   :  { %v1323_v24 = vld [vmem:[%s2478_s0 + $0x9d] sm:$0x20]   ;;  %v1347_v36 = vld [vmem:[%s2478_s0 + $0x8d] sm:$0x10]   ;;  %v965_v38 = vsel %vm67_vm3, %v1322_v23, %v961_v32  ;;  %v1064_v44 = vsel %vm63_vm2, %v1346_v35, %v1060_v39  ;;  %v1337_v47 = vld [vmem:[%s2478_s0 + $0x3f] sm:$0x4]   ;;  %v1022_v50 = vsel %vm55_vm0, %v1336_v46, %v1335_v45 }
  0x51   :  { %v1324_v25 = vld [vmem:[%s2478_s0 + $0xbc] sm:$0x40]   ;;  %v1348_v40 = vld [vmem:[%s2478_s0 + $0xac] sm:$0x20]   ;;  %v969_v43 = vsel %vm71_vm4, %v1323_v24, %v965_v38  ;;  %v1068_v49 = vsel %vm67_vm3, %v1347_v36, %v1064_v44  ;;  %v1338_v51 = vld [vmem:[%s2478_s0 + $0x5e] sm:$0x8]   ;;  %v1026_v56 = vsel %vm59_vm1, %v1337_v47, %v1022_v50 }
  0x52   :  { %v1325_v28 = vld [vmem:[%s2478_s0 + $0xdb] sm:$0x80]   ;;  %v1349_v41 = vld [vmem:[%s2478_s0 + $0xcb] sm:$0x40]   ;;  %v973_v48 = vsel %vm75_vm5, %v1324_v25, %v969_v43  ;;  %v1339_v52 = vld [vmem:[%s2478_s0 + $0x7d] sm:$0x10]   ;;  %v1072_v55 = vsel %vm71_vm4, %v1348_v40, %v1068_v49  ;;  %v1030_v60 = vsel %vm63_vm2, %v1338_v51, %v1026_v56 }
  0x53   :  { %v1350_v42 = vld [vmem:[%s2478_s0 + $0xea] sm:$0x80]   ;;  %v1340_v53 = vld [vmem:[%s2478_s0 + $0x9c] sm:$0x20]   ;;  %v977_v54 = vsel %vm79_vm6, %v1325_v28, %v973_v48  ;;  %v1076_v59 = vsel %vm75_vm5, %v1349_v41, %v1072_v55  ;;  %s12_s10 = smov 192  ;;  %v1034_v63 = vsel %vm67_vm3, %v1339_v52, %v1030_v60  ;;  %vm14_vm9 = vcmask 1047558  }
  0x54   :  { %v1341_v57 = vld [vmem:[%s2478_s0 + $0xbb] sm:$0x40]   ;;  %978 = vrot.lane.b32.xlu0 %v977_v54, %s1380_s19  ;;  %v3_v61 = vld [vmem:[%s2478_s0] ss:$16 sm:%s2_s7]   ;;  %v1080_v62 = vsel %vm79_vm6, %v1350_v42, %v1076_v59  ;;  %s25_s14 = smov 3  ;;  %s28_s15 = smov 12  ;;  %v1038_v1 = vsel %vm71_vm4, %v1340_v53, %v1034_v63 }
  0x55   :  { %v1342_v58 = vld [vmem:[%s2478_s0 + $0xda] sm:$0x80]   ;;  %v5_v0 = vld [vmem:[%s2478_s0] ss:$16 sm:%s4_s8]   ;;  %s1381_s11 = smov 8   ;;  %vm16_vm10 = vcmask 64512   ;;  %v1042_v4 = vsel %vm75_vm5, %v1341_v57, %v1038_v1 }
  0x56   :  { %1081 = vrot.lane.b32.xlu1 %v1080_v62, %s1381_s11  ;;  %s33_s18 = smov 48  ;;  %s38_s19 = smov 192  ;;  %v7_v2 = vsel %vm6_vm7, %v5_v0, %v3_v61  ;;  %v9_v3 = vld [vmem:[%s2478_s0] ss:$16 sm:%s8_s9]   ;;  %v1046_v8 = vsel %vm79_vm6, %v1342_v58, %v1042_v4  ;;  %vm83_vm11 = vcmask 1048512   ;;  %vm152_vm12 = vcmask 982912  }
  0x57   :  { %v11_v5 = vsel %vm10_vm8, %v9_v3, %v7_v2  ;;  %v13_v6 = vld [vmem:[%s2478_s0] ss:$16 sm:%s12_s10]   ;;  %vm221_vm13 = vcmask 917312   ;;  %vm290_vm14 = vcmask 851712   ;;  %vm359_vm15 = vcmask 786112  }
  0x58   :  { %v1089_v7 = vld [vmem:[%s2478_s0 + $0x80] ss:$16 sm:%s25_s14]   ;;  %v15_v9 = vsel %vm14_vm9, %v13_v6, %v11_v5  ;;  %1047 = vrot.lane.b32.xlu0 %v1046_v8, %s1381_s11  ;;  %vm428_vm0 = vcmask 720512   ;;  %vm497_vm1 = vcmask 654912   ;;  %vm566_vm2 = vcmask 589312  }
  0x59   :  { %v1090_v10 = vld [vmem:[%s2478_s0 + $0x80] ss:$16 sm:%s28_s15]   ;;  %17 = vst.msk [vmem:[%s2479_s1] ss:$8 sm:$0x3] %vm16_vm10, %v15_v9   ;;  %vm635_vm3 = vcmask 523712  }
  0x5a   :  { %v1091_v11 = vld [vmem:[%s2478_s0 + $0x80] ss:$16 sm:%s33_s18]   ;;  %1086 = vst.msk [vmem:[%s2479_s1 - $0xf] ss:$8 sm:$0xc] %vm16_vm10, %v15_v9   ;;  %v31_v12 = vsel %vm6_vm7, %v1090_v10, %v1089_v7  ;;  %vm704_vm4 = vcmask 458112  }
  0x5b   :  { %1087 = vst.msk [vmem:[%s2479_s1 - $0x1e] ss:$8 sm:$0x30] %vm16_vm10, %v15_v9   ;;  %1088 = vst.msk [vmem:[%s2479_s1 - $0x2d] ss:$8 sm:$0xc0] %vm16_vm10, %v15_v9   ;;  %v36_v14 = vsel %vm10_vm8, %v1091_v11, %v31_v12 }
  0x5c   :  { %v1092_v13 = vld [vmem:[%s2478_s0 + $0x80] ss:$16 sm:%s38_s19]   ;;  %vm773_vm5 = vcmask 392512   ;;  %vm842_vm6 = vcmask 326912   ;;  %vm911_vm7 = vcmask 261312   ;;  %vm980_vm8 = vcmask 195712  }
  0x5d   :  { %v41_v15 = vsel %vm14_vm9, %v1092_v13, %v36_v14  ;;  %vm1049_vm9 = vcmask 130112  }
  0x5e   :  { %1093 = vst.msk [vmem:[%s2479_s1 + $0x4] ss:$8 sm:$0x3] %vm16_vm10, %v41_v15   ;;  %1094 = vst.msk [vmem:[%s2479_s1 - $0xb] ss:$8 sm:$0xc] %vm16_vm10, %v41_v15  }
  0x5f   :  { %1095 = vst.msk [vmem:[%s2479_s1 - $0x1a] ss:$8 sm:$0x30] %vm16_vm10, %v41_v15   ;;  %1096 = vst.msk [vmem:[%s2479_s1 - $0x29] ss:$8 sm:$0xc0] %vm16_vm10, %v41_v15  }
  0x7c   :  { %v151_v16 = vpop.permute.xlu1 %150  }
  0x7d   :  { %v82_v17 = vpop.permute.xlu0 %81  }
  0x7e   :  { %84 = vst.msk [vmem:[%s2479_s1] sm:$0xff] %vm83_vm11, %v82_v17  }
  0x7f   :  { %153 = vst.msk [vmem:[%s2479_s1] sm:$0xff] %vm152_vm12, %v151_v16  }
  0x80   :  { %v185_v18 = vpop.permute.xlu1 %184  }
  0x84   :  { %v116_v19 = vpop.permute.xlu0 %115  }
  0x85   :  { %1113 = vst.msk [vmem:[%s2479_s1 + $0x8] sm:$0xff] %vm83_vm11, %v116_v19   ;;  %v254_v20 = vpop.permute.xlu1 %253  }
  0x86   :  { %1130 = vst.msk [vmem:[%s2479_s1 + $0x8] sm:$0xff] %vm152_vm12, %v185_v18  }
  0x87   :  { %1147 = vst.msk [vmem:[%s2479_s1 + $0x8] sm:$0xff] %vm221_vm13, %v254_v20  }
  0x88   :  { %v220_v21 = vpop.permute.xlu0 %219  }
  0x89   :  { %222 = vst.msk [vmem:[%s2479_s1] sm:$0xff] %vm221_vm13, %v220_v21  }
  0x8c   :  { %v323_v22 = vpop.permute.xlu1 %322  }
  0x8d   :  { %1164 = vst.msk [vmem:[%s2479_s1 + $0x8] sm:$0xff] %vm290_vm14, %v323_v22   ;;  %v289_v23 = vpop.permute.xlu0 %288  }
  0x8e   :  { %291 = vst.msk [vmem:[%s2479_s1] sm:$0xff] %vm290_vm14, %v289_v23  }
  0x90   :  { %v392_v24 = vpop.permute.xlu1 %391  }
  0x91   :  { %1181 = vst.msk [vmem:[%s2479_s1 + $0x8] sm:$0xff] %vm359_vm15, %v392_v24  }
  0x95   :  { %v358_v25 = vpop.permute.xlu0 %357   ;;  %v461_v26 = vpop.permute.xlu1 %460  }
  0x96   :  { %360 = vst.msk [vmem:[%s2479_s1] sm:$0xff] %vm359_vm15, %v358_v25  }
  0x97   :  { %1198 = vst.msk [vmem:[%s2479_s1 + $0x8] sm:$0xff] %vm428_vm0, %v461_v26  }
  0x99   :  { %v427_v27 = vpop.permute.xlu0 %426  }
  0x9a   :  { %429 = vst.msk [vmem:[%s2479_s1] sm:$0xff] %vm428_vm0, %v427_v27  }
  0x9d   :  { %v530_v28 = vpop.permute.xlu1 %529   ;;  %v496_v29 = vpop.permute.xlu0 %495  }
  0x9e   :  { %1215 = vst.msk [vmem:[%s2479_s1 + $0x8] sm:$0xff] %vm497_vm1, %v530_v28   ;;  %498 = vst.msk [vmem:[%s2479_s1] sm:$0xff] %vm497_vm1, %v496_v29  }
  0xa1   :  { %v599_v30 = vpop.permute.xlu1 %598  }
  0xa2   :  { %1232 = vst.msk [vmem:[%s2479_s1 + $0x8] sm:$0xff] %vm566_vm2, %v599_v30  }
  0xa5   :  { %v565_v31 = vpop.permute.xlu0 %564  }
  0xa6   :  { %567 = vst.msk [vmem:[%s2479_s1] sm:$0xff] %vm566_vm2, %v565_v31  }
  0xa7   :  { %v668_v32 = vpop.permute.xlu1 %667  }
  0xa8   :  { %1249 = vst.msk [vmem:[%s2479_s1 + $0x8] sm:$0xff] %vm635_vm3, %v668_v32  }
  0xa9   :  { %v634_v33 = vpop.permute.xlu0 %633  }
  0xaa   :  { %636 = vst.msk [vmem:[%s2479_s1] sm:$0xff] %vm635_vm3, %v634_v33  }
  0xad   :  { %v737_v34 = vpop.permute.xlu1 %736  }
  0xae   :  { %1266 = vst.msk [vmem:[%s2479_s1 + $0x8] sm:$0xff] %vm704_vm4, %v737_v34  }
  0xaf   :  { %v703_v35 = vpop.permute.xlu0 %702  }
  0xb0   :  { %705 = vst.msk [vmem:[%s2479_s1] sm:$0xff] %vm704_vm4, %v703_v35  }
  0xb1   :  { %v806_v36 = vpop.permute.xlu1 %805  }
  0xb2   :  { %1283 = vst.msk [vmem:[%s2479_s1 + $0x8] sm:$0xff] %vm773_vm5, %v806_v36  }
  0xb5   :  { %v772_v37 = vpop.permute.xlu0 %771  }
  0xb6   :  { %774 = vst.msk [vmem:[%s2479_s1] sm:$0xff] %vm773_vm5, %v772_v37  }
  0xb7   :  { %v875_v38 = vpop.permute.xlu1 %874  }
  0xb8   :  { %1300 = vst.msk [vmem:[%s2479_s1 + $0x8] sm:$0xff] %vm842_vm6, %v875_v38  }
  0xb9   :  { %v841_v39 = vpop.permute.xlu0 %840  }
  0xba   :  { %843 = vst.msk [vmem:[%s2479_s1] sm:$0xff] %vm842_vm6, %v841_v39  }
  0xbd   :  { %v944_v40 = vpop.permute.xlu1 %943  }
  0xbe   :  { %1317 = vst.msk [vmem:[%s2479_s1 + $0x8] sm:$0xff] %vm911_vm7, %v944_v40  }
  0xbf   :  { %v910_v41 = vpop.permute.xlu0 %909  }
  0xc0   :  { %912 = vst.msk [vmem:[%s2479_s1] sm:$0xff] %vm911_vm7, %v910_v41  }
  0xc1   :  { %v1013_v42 = vpop.permute.xlu1 %1012  }
  0xc2   :  { %1334 = vst.msk [vmem:[%s2479_s1 + $0x8] sm:$0xff] %vm980_vm8, %v1013_v42  }
  0xc6   :  { %v979_v43 = vpop.permute.xlu0 %978  }
  0xc7   :  { %981 = vst.msk [vmem:[%s2479_s1] sm:$0xff] %vm980_vm8, %v979_v43  }
  0xc8   :  { %v1082_v44 = vpop.permute.xlu1 %1081  }
  0xc9   :  { %1351 = vst.msk [vmem:[%s2479_s1 + $0x8] sm:$0xff] %vm1049_vm9, %v1082_v44  }
  0xca   :  { %v1048_v45 = vpop.permute.xlu0 %1047  }
  0xcb   :  { %1050 = vst.msk [vmem:[%s2479_s1] sm:$0xff] %vm1049_vm9, %v1048_v45  }

// kernel: tile.19
= control target key start
LH: loop header
LB: loop body
LE: loop exit
PB: predicated region body
PF: predicated region fallthrough
CT: control target
= control target key end

     0   :  { %vm5_vm0 = vcmask 1041409   ;;  %vm9_vm1 = vcmask 1042434   ;;  %vm13_vm2 = vcmask 1043459   ;;  %s741_s30 = smov 124   ;;  %s742_s8 = smov 116   ;;  %vm15_vm3 = vcmask 31744   ;;  %s1266_s0 = inlined_call_operand.vmem [shape: f32[32,4,4], index: 0, kind: input, shape index: {}]   ;;  %s1267_s1 = inlined_call_operand.vmem [shape: f32[128,4], index: 1, kind: output, shape index: {}]  }
   0x1   :  { %v586_v0 = vld [vmem:[%s1266_s0 + $0x1f] sm:$0x1]   ;;  %v594_v5 = vld [vmem:[%s1266_s0 + $0x1d] sm:$0x1]   ;;  %v590_v11 = vld [vmem:[%s1266_s0 + $0x1e] sm:$0x1]  }
   0x2   :  { %v587_v1 = vld [vmem:[%s1266_s0 + $0x3e] sm:$0x2]   ;;  %v595_v6 = vld [vmem:[%s1266_s0 + $0x3c] sm:$0x2]   ;;  %v591_v14 = vld [vmem:[%s1266_s0 + $0x3d] sm:$0x2]  }
   0x3   :  { %v588_v2 = vld [vmem:[%s1266_s0 + $0x5d] sm:$0x4]   ;;  %v22_v4 = vsel %vm5_vm0, %v587_v1, %v586_v0  ;;  %v596_v7 = vld [vmem:[%s1266_s0 + $0x5b] sm:$0x4]   ;;  %v58_v9 = vsel %vm5_vm0, %v595_v6, %v594_v5  ;;  %v592_v15 = vld [vmem:[%s1266_s0 + $0x5c] sm:$0x4]   ;;  %v40_v18 = vsel %vm5_vm0, %v591_v14, %v590_v11 }
   0x4   :  { %v589_v3 = vld [vmem:[%s1266_s0 + $0x7c] sm:$0x8]   ;;  %v26_v8 = vsel %vm9_vm1, %v588_v2, %v22_v4  ;;  %v597_v10 = vld [vmem:[%s1266_s0 + $0x7a] sm:$0x8]   ;;  %v62_v13 = vsel %vm9_vm1, %v596_v7, %v58_v9  ;;  %v593_v16 = vld [vmem:[%s1266_s0 + $0x7b] sm:$0x8]   ;;  %v44_v22 = vsel %vm9_vm1, %v592_v15, %v40_v18 }
   0x5   :  { %v30_v12 = vsel %vm13_vm2, %v589_v3, %v26_v8  ;;  %v66_v17 = vsel %vm13_vm2, %v597_v10, %v62_v13  ;;  %v598_v19 = vld [vmem:[%s1266_s0 + $0x1c] sm:$0x1]   ;;  %v602_v25 = vld [vmem:[%s1266_s0 + $0x1b] sm:$0x1]   ;;  %v48_v26 = vsel %vm13_vm2, %v593_v16, %v44_v22  ;;  %v606_v33 = vld [vmem:[%s1266_s0 + $0x1a] sm:$0x1]  }
   0x6   :  { %31 = vrot.lane.b32.xlu0 %v30_v12, %s741_s30  ;;  %v599_v20 = vld [vmem:[%s1266_s0 + $0x3b] sm:$0x2]   ;;  %67 = vrot.lane.b32.xlu1 %v66_v17, %s742_s8  ;;  %v603_v28 = vld [vmem:[%s1266_s0 + $0x3a] sm:$0x2]   ;;  %s743_s25 = smov 120   ;;  %s744_s30 = smov 112  }
   0x7   :  { %v600_v21 = vld [vmem:[%s1266_s0 + $0x5a] sm:$0x4]   ;;  %v76_v23 = vsel %vm5_vm0, %v599_v20, %v598_v19  ;;  %v604_v29 = vld [vmem:[%s1266_s0 + $0x59] sm:$0x4]   ;;  %v94_v32 = vsel %vm5_vm0, %v603_v28, %v602_v25  ;;  %v607_v34 = vld [vmem:[%s1266_s0 + $0x39] sm:$0x2]  }
   0x8   :  { %v601_v24 = vld [vmem:[%s1266_s0 + $0x79] sm:$0x8]   ;;  %v80_v27 = vsel %vm9_vm1, %v600_v21, %v76_v23  ;;  %v605_v30 = vld [vmem:[%s1266_s0 + $0x78] sm:$0x8]   ;;  %v608_v35 = vld [vmem:[%s1266_s0 + $0x58] sm:$0x4]   ;;  %v98_v36 = vsel %vm9_vm1, %v604_v29, %v94_v32  ;;  %v112_v37 = vsel %vm5_vm0, %v607_v34, %v606_v33 }
   0x9   :  { %v84_v31 = vsel %vm13_vm2, %v601_v24, %v80_v27  ;;  %v609_v38 = vld [vmem:[%s1266_s0 + $0x77] sm:$0x8]   ;;  %v610_v39 = vld [vmem:[%s1266_s0 + $0x19] sm:$0x1]   ;;  %v102_v40 = vsel %vm13_vm2, %v605_v30, %v98_v36  ;;  %v116_v41 = vsel %vm9_vm1, %v608_v35, %v112_v37  ;;  %v614_v47 = vld [vmem:[%s1266_s0 + $0x18] sm:$0x1]  }
   0xa   :  { %49 = vrot.lane.b32.xlu0 %v48_v26, %s743_s25  ;;  %85 = vrot.lane.b32.xlu1 %v84_v31, %s744_s30  ;;  %v611_v42 = vld [vmem:[%s1266_s0 + $0x38] sm:$0x2]   ;;  %v120_v45 = vsel %vm13_vm2, %v609_v38, %v116_v41  ;;  %v615_v48 = vld [vmem:[%s1266_s0 + $0x37] sm:$0x2]   ;;  %s745_s18 = smov 108   ;;  %s746_s23 = smov 104  }
   0xb   :  { %v612_v43 = vld [vmem:[%s1266_s0 + $0x57] sm:$0x4]   ;;  %v130_v46 = vsel %vm5_vm0, %v611_v42, %v610_v39  ;;  %v616_v49 = vld [vmem:[%s1266_s0 + $0x56] sm:$0x4]   ;;  %v148_v51 = vsel %vm5_vm0, %v615_v48, %v614_v47  ;;  %v618_v53 = vld [vmem:[%s1266_s0 + $0x17] sm:$0x1]  }
   0xc   :  { %v613_v44 = vld [vmem:[%s1266_s0 + $0x76] sm:$0x8]   ;;  %v134_v50 = vsel %vm9_vm1, %v612_v43, %v130_v46  ;;  %v617_v52 = vld [vmem:[%s1266_s0 + $0x75] sm:$0x8]   ;;  %v152_v54 = vsel %vm9_vm1, %v616_v49, %v148_v51  ;;  %v619_v55 = vld [vmem:[%s1266_s0 + $0x36] sm:$0x2]  }
   0xd   :  { %v620_v56 = vld [vmem:[%s1266_s0 + $0x55] sm:$0x4]   ;;  %v138_v57 = vsel %vm13_vm2, %v613_v44, %v134_v50  ;;  %v166_v58 = vsel %vm5_vm0, %v619_v55, %v618_v53  ;;  %v622_v59 = vld [vmem:[%s1266_s0 + $0x16] sm:$0x1]   ;;  %v156_v62 = vsel %vm13_vm2, %v617_v52, %v152_v54  ;;  %v626_v2 = vld [vmem:[%s1266_s0 + $0x15] sm:$0x1]  }
   0xe   :  { %103 = vrot.lane.b32.xlu0 %v102_v40, %s745_s18  ;;  %121 = vrot.lane.b32.xlu1 %v120_v45, %s746_s23  ;;  %v623_v60 = vld [vmem:[%s1266_s0 + $0x35] sm:$0x2]   ;;  %v170_v63 = vsel %vm9_vm1, %v620_v56, %v166_v58  ;;  %v621_v0 = vld [vmem:[%s1266_s0 + $0x74] sm:$0x8]   ;;  %s747_s11 = smov 100   ;;  %s748_s18 = smov 96  }
   0xf   :  { %v624_v61 = vld [vmem:[%s1266_s0 + $0x54] sm:$0x4]   ;;  %v184_v1 = vsel %vm5_vm0, %v623_v60, %v622_v59  ;;  %v627_v5 = vld [vmem:[%s1266_s0 + $0x34] sm:$0x2]   ;;  %v630_v8 = vld [vmem:[%s1266_s0 + $0x14] sm:$0x1]   ;;  %v174_v11 = vsel %vm13_vm2, %v621_v0, %v170_v63 }
  0x10   :  { %v188_v3 = vsel %vm9_vm1, %v624_v61, %v184_v1  ;;  %v625_v4 = vld [vmem:[%s1266_s0 + $0x73] sm:$0x8]   ;;  %v628_v6 = vld [vmem:[%s1266_s0 + $0x53] sm:$0x4]   ;;  %v202_v7 = vsel %vm5_vm0, %v627_v5, %v626_v2  ;;  %v631_v9 = vld [vmem:[%s1266_s0 + $0x33] sm:$0x2]  }
  0x11   :  { %v632_v10 = vld [vmem:[%s1266_s0 + $0x52] sm:$0x4]   ;;  %v220_v12 = vsel %vm5_vm0, %v631_v9, %v630_v8  ;;  %v634_v13 = vld [vmem:[%s1266_s0 + $0x13] sm:$0x1]   ;;  %v192_v14 = vsel %vm13_vm2, %v625_v4, %v188_v3  ;;  %v206_v15 = vsel %vm9_vm1, %v628_v6, %v202_v7  ;;  %v629_v16 = vld [vmem:[%s1266_s0 + $0x72] sm:$0x8]  }
  0x12   :  { %139 = vrot.lane.b32.xlu0 %v138_v57, %s747_s11  ;;  %157 = vrot.lane.b32.xlu1 %v156_v62, %s748_s18  ;;  %v633_v17 = vld [vmem:[%s1266_s0 + $0x71] sm:$0x8]   ;;  %v635_v18 = vld [vmem:[%s1266_s0 + $0x32] sm:$0x2]   ;;  %v224_v19 = vsel %vm9_vm1, %v632_v10, %v220_v12  ;;  %s749_s4 = smov 92   ;;  %s750_s9 = smov 88   ;;  %v210_v27 = vsel %vm13_vm2, %v629_v16, %v206_v15 }
  0x13   :  { %v238_v20 = vsel %vm5_vm0, %v635_v18, %v634_v13  ;;  %v636_v21 = vld [vmem:[%s1266_s0 + $0x51] sm:$0x4]   ;;  %v638_v22 = vld [vmem:[%s1266_s0 + $0x12] sm:$0x1]   ;;  %v642_v26 = vld [vmem:[%s1266_s0 + $0x11] sm:$0x1]   ;;  %v228_v29 = vsel %vm13_vm2, %v633_v17, %v224_v19 }
  0x14   :  { %v639_v23 = vld [vmem:[%s1266_s0 + $0x31] sm:$0x2]   ;;  %v643_v28 = vld [vmem:[%s1266_s0 + $0x30] sm:$0x2]   ;;  %v242_v30 = vsel %vm9_vm1, %v636_v21, %v238_v20  ;;  %v637_v31 = vld [vmem:[%s1266_s0 + $0x70] sm:$0x8]  }
  0x15   :  { %v256_v24 = vsel %vm5_vm0, %v639_v23, %v638_v22  ;;  %v640_v25 = vld [vmem:[%s1266_s0 + $0x50] sm:$0x4]   ;;  %v646_v32 = vld [vmem:[%s1266_s0 + $0x10] sm:$0x1]   ;;  %v274_v36 = vsel %vm5_vm0, %v643_v28, %v642_v26  ;;  %v644_v37 = vld [vmem:[%s1266_s0 + $0x4f] sm:$0x4]   ;;  %v246_v42 = vsel %vm13_vm2, %v637_v31, %v242_v30 }
  0x16   :  { %175 = vrot.lane.b32.xlu0 %v174_v11, %s749_s4  ;;  %193 = vrot.lane.b32.xlu1 %v192_v14, %s750_s9  ;;  %v647_v33 = vld [vmem:[%s1266_s0 + $0x2f] sm:$0x2]   ;;  %v260_v34 = vsel %vm9_vm1, %v640_v25, %v256_v24  ;;  %v641_v35 = vld [vmem:[%s1266_s0 + $0x6f] sm:$0x8]   ;;  %s751_s22 = smov 84   ;;  %s752_s29 = smov 80   ;;  %v278_v46 = vsel %vm9_vm1, %v644_v37, %v274_v36 }
  0x17   :  { %v292_v38 = vsel %vm5_vm0, %v647_v33, %v646_v32  ;;  %v648_v39 = vld [vmem:[%s1266_s0 + $0x4e] sm:$0x4]   ;;  %v650_v40 = vld [vmem:[%s1266_s0 + $0xf] sm:$0x1]   ;;  %v654_v43 = vld [vmem:[%s1266_s0 + $0xe] sm:$0x1]   ;;  %v264_v45 = vsel %vm13_vm2, %v641_v35, %v260_v34 }
  0x18   :  { %v651_v41 = vld [vmem:[%s1266_s0 + $0x2e] sm:$0x2]   ;;  %v655_v44 = vld [vmem:[%s1266_s0 + $0x2d] sm:$0x2]   ;;  %v645_v47 = vld [vmem:[%s1266_s0 + $0x6e] sm:$0x8]   ;;  %v296_v48 = vsel %vm9_vm1, %v648_v39, %v292_v38 }
  0x19   :  { %v649_v49 = vld [vmem:[%s1266_s0 + $0x6d] sm:$0x8]   ;;  %v310_v50 = vsel %vm5_vm0, %v651_v41, %v650_v40  ;;  %v652_v51 = vld [vmem:[%s1266_s0 + $0x4d] sm:$0x4]   ;;  %s753_s11 = smov 76   ;;  %v328_v52 = vsel %vm5_vm0, %v655_v44, %v654_v43  ;;  %s754_s18 = smov 72   ;;  %v282_v56 = vsel %vm13_vm2, %v645_v47, %v278_v46 }
  0x1a   :  { %211 = vrot.lane.b32.xlu0 %v210_v27, %s751_s22  ;;  %229 = vrot.lane.b32.xlu1 %v228_v29, %s752_s29  ;;  %v656_v53 = vld [vmem:[%s1266_s0 + $0x4c] sm:$0x4]   ;;  %v658_v54 = vld [vmem:[%s1266_s0 + $0xd] sm:$0x1]   ;;  %v300_v59 = vsel %vm13_vm2, %v649_v49, %v296_v48  ;;  %v314_v60 = vsel %vm9_vm1, %v652_v51, %v310_v50  ;;  %s755_s29 = smov 68   ;;  %s756_s7 = smov 64  }
  0x1b   :  { %v659_v55 = vld [vmem:[%s1266_s0 + $0x2c] sm:$0x2]   ;;  %v662_v57 = vld [vmem:[%s1266_s0 + $0xc] sm:$0x1]   ;;  %v653_v61 = vld [vmem:[%s1266_s0 + $0x6c] sm:$0x8]   ;;  %v332_v62 = vsel %vm9_vm1, %v656_v53, %v328_v52 }
  0x1c   :  { %v663_v58 = vld [vmem:[%s1266_s0 + $0x2b] sm:$0x2]   ;;  %v657_v63 = vld [vmem:[%s1266_s0 + $0x6b] sm:$0x8]   ;;  %v346_v0 = vsel %vm5_vm0, %v659_v55, %v658_v54  ;;  %v660_v1 = vld [vmem:[%s1266_s0 + $0x4b] sm:$0x4]   ;;  %v318_v6 = vsel %vm13_vm2, %v653_v61, %v314_v60 }
  0x1d   :  { %v364_v2 = vsel %vm5_vm0, %v663_v58, %v662_v57  ;;  %v664_v3 = vld [vmem:[%s1266_s0 + $0x4a] sm:$0x4]   ;;  %v666_v4 = vld [vmem:[%s1266_s0 + $0xb] sm:$0x1]   ;;  %v670_v7 = vld [vmem:[%s1266_s0 + $0xa] sm:$0x1]   ;;  %v336_v9 = vsel %vm13_vm2, %v657_v63, %v332_v62  ;;  %v350_v10 = vsel %vm9_vm1, %v660_v1, %v346_v0 }
  0x1e   :  { %247 = vrot.lane.b32.xlu0 %v246_v42, %s753_s11  ;;  %265 = vrot.lane.b32.xlu1 %v264_v45, %s754_s18  ;;  %v667_v5 = vld [vmem:[%s1266_s0 + $0x2a] sm:$0x2]   ;;  %v671_v8 = vld [vmem:[%s1266_s0 + $0x29] sm:$0x2]   ;;  %v368_v12 = vsel %vm9_vm1, %v664_v3, %v364_v2  ;;  %s757_s18 = smov 60   ;;  %s758_s25 = smov 56  }
  0x1f   :  { %v661_v11 = vld [vmem:[%s1266_s0 + $0x6a] sm:$0x8]   ;;  %v665_v13 = vld [vmem:[%s1266_s0 + $0x69] sm:$0x8]   ;;  %v382_v14 = vsel %vm5_vm0, %v667_v5, %v666_v4  ;;  %v668_v15 = vld [vmem:[%s1266_s0 + $0x49] sm:$0x4]   ;;  %v400_v16 = vsel %vm5_vm0, %v671_v8, %v670_v7 }
  0x20   :  { %v672_v17 = vld [vmem:[%s1266_s0 + $0x48] sm:$0x4]   ;;  %v674_v18 = vld [vmem:[%s1266_s0 + $0x9] sm:$0x1]   ;;  %v354_v20 = vsel %vm13_vm2, %v661_v11, %v350_v10  ;;  %v678_v21 = vld [vmem:[%s1266_s0 + $0x8] sm:$0x1]   ;;  %v372_v23 = vsel %vm13_vm2, %v665_v13, %v368_v12  ;;  %v386_v24 = vsel %vm9_vm1, %v668_v15, %v382_v14 }
  0x21   :  { %v675_v19 = vld [vmem:[%s1266_s0 + $0x28] sm:$0x2]   ;;  %v679_v22 = vld [vmem:[%s1266_s0 + $0x27] sm:$0x2]   ;;  %v669_v25 = vld [vmem:[%s1266_s0 + $0x68] sm:$0x8]   ;;  %v404_v26 = vsel %vm9_vm1, %v672_v17, %v400_v16 }
  0x22   :  { %283 = vrot.lane.b32.xlu0 %v282_v56, %s755_s29  ;;  %301 = vrot.lane.b32.xlu1 %v300_v59, %s756_s7  ;;  %v673_v27 = vld [vmem:[%s1266_s0 + $0x67] sm:$0x8]   ;;  %v418_v28 = vsel %vm5_vm0, %v675_v19, %v674_v18  ;;  %v676_v29 = vld [vmem:[%s1266_s0 + $0x47] sm:$0x4]   ;;  %s759_s7 = smov 52   ;;  %v436_v30 = vsel %vm5_vm0, %v679_v22, %v678_v21  ;;  %s760_s14 = smov 48   ;;  %v390_v34 = vsel %vm13_vm2, %v669_v25, %v386_v24 }
  0x23   :  { %v680_v31 = vld [vmem:[%s1266_s0 + $0x46] sm:$0x4]   ;;  %v682_v32 = vld [vmem:[%s1266_s0 + $0x7] sm:$0x1]   ;;  %v686_v35 = vld [vmem:[%s1266_s0 + $0x6] sm:$0x1]   ;;  %v408_v37 = vsel %vm13_vm2, %v673_v27, %v404_v26  ;;  %v422_v38 = vsel %vm9_vm1, %v676_v29, %v418_v28 }
  0x24   :  { %v683_v33 = vld [vmem:[%s1266_s0 + $0x26] sm:$0x2]   ;;  %v687_v36 = vld [vmem:[%s1266_s0 + $0x25] sm:$0x2]   ;;  %v677_v39 = vld [vmem:[%s1266_s0 + $0x66] sm:$0x8]   ;;  %v440_v40 = vsel %vm9_vm1, %v680_v31, %v436_v30 }
  0x25   :  { %v681_v41 = vld [vmem:[%s1266_s0 + $0x65] sm:$0x8]   ;;  %v454_v42 = vsel %vm5_vm0, %v683_v33, %v682_v32  ;;  %v684_v43 = vld [vmem:[%s1266_s0 + $0x45] sm:$0x4]   ;;  %v472_v45 = vsel %vm5_vm0, %v687_v36, %v686_v35  ;;  %v688_v46 = vld [vmem:[%s1266_s0 + $0x44] sm:$0x4]   ;;  %v426_v49 = vsel %vm13_vm2, %v677_v39, %v422_v38 }
  0x26   :  { %319 = vrot.lane.b32.xlu0 %v318_v6, %s757_s18  ;;  %337 = vrot.lane.b32.xlu1 %v336_v9, %s758_s25  ;;  %s761_s25 = smov 44   ;;  %v685_v44 = vld [vmem:[%s1266_s0 + $0x64] sm:$0x8]   ;;  %v690_v47 = vld [vmem:[%s1266_s0 + $0x5] sm:$0x1]   ;;  %s762_s5 = smov 40   ;;  %v444_v53 = vsel %vm13_vm2, %v681_v41, %v440_v40  ;;  %v458_v54 = vsel %vm9_vm1, %v684_v43, %v454_v42  ;;  %v476_v58 = vsel %vm9_vm1, %v688_v46, %v472_v45 }
  0x27   :  { %v691_v48 = vld [vmem:[%s1266_s0 + $0x24] sm:$0x2]   ;;  %v689_v50 = vld [vmem:[%s1266_s0 + $0x63] sm:$0x8]   ;;  %v694_v51 = vld [vmem:[%s1266_s0 + $0x4] sm:$0x1]   ;;  %v462_v3 = vsel %vm13_vm2, %v685_v44, %v458_v54 }
  0x28   :  { %v695_v52 = vld [vmem:[%s1266_s0 + $0x23] sm:$0x2]   ;;  %v692_v55 = vld [vmem:[%s1266_s0 + $0x43] sm:$0x4]   ;;  %v584_v57 = vld [vmem:[%s1266_s0 + $0x3e] sm:$0x4]   ;;  %v490_v59 = vsel %vm5_vm0, %v691_v48, %v690_v47  ;;  %v480_v7 = vsel %vm13_vm2, %v689_v50, %v476_v58 }
  0x29   :  { %v696_v56 = vld [vmem:[%s1266_s0 + $0x42] sm:$0x4]   ;;  %v585_v60 = vld [vmem:[%s1266_s0 + $0x5d] sm:$0x8]   ;;  %s763_s24 = smov 36   ;;  %v508_v63 = vsel %vm5_vm0, %v695_v52, %v694_v51  ;;  %s764_s29 = smov 32   ;;  %v494_v8 = vsel %vm9_vm1, %v692_v55, %v490_v59 }
  0x2a   :  { %355 = vrot.lane.b32.xlu0 %v354_v20, %s759_s7  ;;  %373 = vrot.lane.b32.xlu1 %v372_v23, %s760_s14  ;;  %v2_v61 = vld [vmem:[%s1266_s0] sm:$0x1]   ;;  %v698_v0 = vld [vmem:[%s1266_s0 + $0x3] sm:$0x1]   ;;  %v512_v11 = vsel %vm9_vm1, %v696_v56, %v508_v63  ;;  %s765_s11 = smov 28   ;;  %s766_s18 = smov 24  }
  0x2b   :  { %v583_v62 = vld [vmem:[%s1266_s0 + $0x1f] sm:$0x2]   ;;  %v699_v1 = vld [vmem:[%s1266_s0 + $0x22] sm:$0x2]   ;;  %v702_v4 = vld [vmem:[%s1266_s0 + $0x2] sm:$0x1]  }
  0x2c   :  { %v6_v2 = vsel %vm5_vm0, %v583_v62, %v2_v61  ;;  %v703_v5 = vld [vmem:[%s1266_s0 + $0x21] sm:$0x2]   ;;  %v693_v9 = vld [vmem:[%s1266_s0 + $0x62] sm:$0x8]   ;;  %v697_v12 = vld [vmem:[%s1266_s0 + $0x61] sm:$0x8]   ;;  %v526_v13 = vsel %vm5_vm0, %v699_v1, %v698_v0 }
  0x2d   :  { %v10_v6 = vsel %vm9_vm1, %v584_v57, %v6_v2  ;;  %v700_v14 = vld [vmem:[%s1266_s0 + $0x41] sm:$0x4]   ;;  %v544_v15 = vsel %vm5_vm0, %v703_v5, %v702_v4  ;;  %v704_v16 = vld [vmem:[%s1266_s0 + $0x40] sm:$0x4]   ;;  %v706_v17 = vld [vmem:[%s1266_s0 + $0x1] sm:$0x1]   ;;  %v498_v19 = vsel %vm13_vm2, %v693_v9, %v494_v8  ;;  %v516_v20 = vsel %vm13_vm2, %v697_v12, %v512_v11 }
  0x2e   :  { %391 = vrot.lane.b32.xlu0 %v390_v34, %s761_s25  ;;  %409 = vrot.lane.b32.xlu1 %v408_v37, %s762_s5  ;;  %v14_v10 = vsel %vm13_vm2, %v585_v60, %v10_v6  ;;  %v707_v18 = vld [vmem:[%s1266_s0 + $0x20] sm:$0x2]   ;;  %v530_v21 = vsel %vm9_vm1, %v700_v14, %v526_v13  ;;  %v701_v22 = vld [vmem:[%s1266_s0 + $0x60] sm:$0x8]   ;;  %v548_v23 = vsel %vm9_vm1, %v704_v16, %v544_v15  ;;  %s767_s25 = smov 20   ;;  %s768_s26 = smov 16  }
  0x2f   :  { %16 = vst.msk [vmem:[#allocation0] sm:$0xf] %vm15_vm3, %v14_v10   ;;  %v705_v24 = vld [vmem:[%s1266_s0 + $0x5f] sm:$0x8]   ;;  %v562_v25 = vsel %vm5_vm0, %v707_v18, %v706_v17  ;;  %v708_v26 = vld [vmem:[%s1266_s0 + $0x3f] sm:$0x4]   ;;  %v534_v27 = vsel %vm13_vm2, %v701_v22, %v530_v21 }
  0x30   :  { %v552_v28 = vsel %vm13_vm2, %v705_v24, %v548_v23  ;;  %v566_v29 = vsel %vm9_vm1, %v708_v26, %v562_v25  ;;  %v709_v30 = vld [vmem:[%s1266_s0 + $0x5e] sm:$0x8]   ;;  %s769_s0 = smov 12   ;;  %s771_s30 = smov 4   ;;  %vm33_vm4 = vcmask 1048544   ;;  %vm51_vm5 = vcmask 1015744  }
  0x31   :  { %v570_v31 = vsel %vm13_vm2, %v709_v30, %v566_v29  ;;  %vm69_vm6 = vcmask 982944   ;;  %vm87_vm7 = vcmask 950144   ;;  %vm105_vm8 = vcmask 917344  }
  0x32   :  { %427 = vrot.lane.b32.xlu0 %v426_v49, %s763_s24  ;;  %445 = vrot.lane.b32.xlu1 %v444_v53, %s764_s29  ;;  %s770_s29 = smov 8   ;;  %vm123_vm9 = vcmask 884544   ;;  %vm141_vm10 = vcmask 851744   ;;  %vm159_vm11 = vcmask 818944   ;;  %vm177_vm12 = vcmask 786144  }
  0x33   :  { %vm195_vm13 = vcmask 753344   ;;  %vm213_vm14 = vcmask 720544   ;;  %vm231_vm15 = vcmask 687744   ;;  %vm249_vm0 = vcmask 654944  }
  0x34   :  { %vm267_vm1 = vcmask 622144   ;;  %vm285_vm2 = vcmask 589344   ;;  %vm303_vm3 = vcmask 556544  }
  0x36   :  { %463 = vrot.lane.b32.xlu0 %v462_v3, %s765_s11  ;;  %481 = vrot.lane.b32.xlu1 %v480_v7, %s766_s18 }
  0x3a   :  { %499 = vrot.lane.b32.xlu0 %v498_v19, %s767_s25  ;;  %517 = vrot.lane.b32.xlu1 %v516_v20, %s768_s26 }
  0x3e   :  { %535 = vrot.lane.b32.xlu0 %v534_v27, %s769_s0  ;;  %553 = vrot.lane.b32.xlu1 %v552_v28, %s770_s29 }
  0x42   :  { %571 = vrot.lane.b32.xlu0 %v570_v31, %s771_s30 }
  0x78   :  { %v32_v32 = vpop.permute.xlu0 %31   ;;  %v68_v33 = vpop.permute.xlu1 %67  }
  0x79   :  { %34 = vst.msk [vmem:[#allocation0] sm:$0xf] %vm33_vm4, %v32_v32   ;;  %vm321_vm4 = vcmask 523744  }
  0x7c   :  { %v50_v34 = vpop.permute.xlu0 %49   ;;  %v86_v35 = vpop.permute.xlu1 %85  }
  0x7d   :  { %52 = vst.msk [vmem:[#allocation0] sm:$0xf] %vm51_vm5, %v50_v34   ;;  %vm339_vm5 = vcmask 490944  }
  0x7e   :  { %70 = vst.msk [vmem:[#allocation0] sm:$0xf] %vm69_vm6, %v68_v33   ;;  %vm357_vm6 = vcmask 458144  }
  0x7f   :  { %88 = vst.msk [vmem:[#allocation0] sm:$0xf] %vm87_vm7, %v86_v35   ;;  %vm375_vm7 = vcmask 425344  }
  0x80   :  { %v104_v36 = vpop.permute.xlu0 %103   ;;  %v122_v37 = vpop.permute.xlu1 %121  }
  0x81   :  { %106 = vst.msk [vmem:[#allocation0] sm:$0xf] %vm105_vm8, %v104_v36   ;;  %vm393_vm8 = vcmask 392544  }
  0x82   :  { %124 = vst.msk [vmem:[#allocation0] sm:$0xf] %vm123_vm9, %v122_v37   ;;  %vm411_vm9 = vcmask 359744  }
  0x84   :  { %v140_v38 = vpop.permute.xlu0 %139   ;;  %v158_v39 = vpop.permute.xlu1 %157  }
  0x85   :  { %142 = vst.msk [vmem:[#allocation0] sm:$0xf] %vm141_vm10, %v140_v38   ;;  %vm429_vm10 = vcmask 326944  }
  0x86   :  { %160 = vst.msk [vmem:[#allocation0] sm:$0xf] %vm159_vm11, %v158_v39   ;;  %vm447_vm11 = vcmask 294144  }
  0x88   :  { %v176_v40 = vpop.permute.xlu0 %175   ;;  %v194_v41 = vpop.permute.xlu1 %193  }
  0x89   :  { %178 = vst.msk [vmem:[#allocation0] sm:$0xf] %vm177_vm12, %v176_v40   ;;  %vm465_vm12 = vcmask 261344  }
  0x8a   :  { %196 = vst.msk [vmem:[#allocation0] sm:$0xf] %vm195_vm13, %v194_v41   ;;  %vm483_vm13 = vcmask 228544  }
  0x8c   :  { %v212_v42 = vpop.permute.xlu0 %211   ;;  %v230_v43 = vpop.permute.xlu1 %229  }
  0x8d   :  { %214 = vst.msk [vmem:[#allocation0] sm:$0xf] %vm213_vm14, %v212_v42   ;;  %vm501_vm14 = vcmask 195744  }
  0x8e   :  { %232 = vst.msk [vmem:[#allocation0] sm:$0xf] %vm231_vm15, %v230_v43   ;;  %vm519_vm15 = vcmask 162944  }
  0x90   :  { %v248_v44 = vpop.permute.xlu0 %247   ;;  %v266_v45 = vpop.permute.xlu1 %265  }
  0x91   :  { %250 = vst.msk [vmem:[#allocation0] sm:$0xf] %vm249_vm0, %v248_v44   ;;  %vm537_vm0 = vcmask 130144  }
  0x92   :  { %268 = vst.msk [vmem:[#allocation0] sm:$0xf] %vm267_vm1, %v266_v45   ;;  %vm555_vm1 = vcmask 97344  }
  0x94   :  { %v284_v46 = vpop.permute.xlu0 %283   ;;  %v302_v47 = vpop.permute.xlu1 %301  }
  0x95   :  { %286 = vst.msk [vmem:[#allocation0] sm:$0xf] %vm285_vm2, %v284_v46   ;;  %vm573_vm2 = vcmask 64544  }
  0x96   :  { %304 = vst.msk [vmem:[#allocation0] sm:$0xf] %vm303_vm3, %v302_v47  }
  0x98   :  { %v320_v48 = vpop.permute.xlu0 %319   ;;  %v338_v49 = vpop.permute.xlu1 %337  }
  0x99   :  { %322 = vst.msk [vmem:[#allocation0] sm:$0xf] %vm321_vm4, %v320_v48  }
  0x9a   :  { %340 = vst.msk [vmem:[#allocation0] sm:$0xf] %vm339_vm5, %v338_v49  }
  0x9c   :  { %v356_v50 = vpop.permute.xlu0 %355   ;;  %v374_v51 = vpop.permute.xlu1 %373  }
  0x9d   :  { %358 = vst.msk [vmem:[#allocation0] sm:$0xf] %vm357_vm6, %v356_v50  }
  0x9e   :  { %376 = vst.msk [vmem:[#allocation0] sm:$0xf] %vm375_vm7, %v374_v51  }
  0xa0   :  { %v392_v52 = vpop.permute.xlu0 %391   ;;  %v410_v53 = vpop.permute.xlu1 %409  }
  0xa1   :  { %394 = vst.msk [vmem:[#allocation0] sm:$0xf] %vm393_vm8, %v392_v52  }
  0xa2   :  { %412 = vst.msk [vmem:[#allocation0] sm:$0xf] %vm411_vm9, %v410_v53  }
  0xa4   :  { %v428_v54 = vpop.permute.xlu0 %427   ;;  %v446_v55 = vpop.permute.xlu1 %445  }
  0xa5   :  { %430 = vst.msk [vmem:[#allocation0] sm:$0xf] %vm429_vm10, %v428_v54  }
  0xa6   :  { %448 = vst.msk [vmem:[#allocation0] sm:$0xf] %vm447_vm11, %v446_v55  }
  0xa8   :  { %v464_v56 = vpop.permute.xlu0 %463   ;;  %v482_v57 = vpop.permute.xlu1 %481  }
  0xa9   :  { %466 = vst.msk [vmem:[#allocation0] sm:$0xf] %vm465_vm12, %v464_v56  }
  0xaa   :  { %484 = vst.msk [vmem:[#allocation0] sm:$0xf] %vm483_vm13, %v482_v57  }
  0xac   :  { %v500_v58 = vpop.permute.xlu0 %499   ;;  %v518_v59 = vpop.permute.xlu1 %517  }
  0xad   :  { %502 = vst.msk [vmem:[#allocation0] sm:$0xf] %vm501_vm14, %v500_v58  }
  0xae   :  { %520 = vst.msk [vmem:[#allocation0] sm:$0xf] %vm519_vm15, %v518_v59  }
  0xb0   :  { %v536_v60 = vpop.permute.xlu0 %535   ;;  %v554_v61 = vpop.permute.xlu1 %553  }
  0xb1   :  { %538 = vst.msk [vmem:[#allocation0] sm:$0xf] %vm537_vm0, %v536_v60  }
  0xb2   :  { %556 = vst.msk [vmem:[#allocation0] sm:$0xf] %vm555_vm1, %v554_v61  }
  0xb4   :  { %v572_v62 = vpop.permute.xlu0 %571  }
  0xb5   :  { %574 = vst.msk [vmem:[#allocation0] sm:$0xf] %vm573_vm2, %v572_v62  }
  0xbc   :  { %v579_v63 = vld [vmem:[#allocation0] sm:$0xf] }
  0xbd   :  { %582 = vst [vmem:[%s1267_s1] sm:$0xf] %v579_v63 }

// kernel: res_block_forward.1
= control target key start
LH: loop header
LB: loop body
LE: loop exit
PB: predicated region body
PF: predicated region fallthrough
CT: control target
= control target key end

     0   :  { %v2028_v1 = vmov 0   ;;  %vm679_vm1 = vcmask 64512   ;;  %vm2030_vm2 = vmmov 0   ;;  %vm1450_vm3 = vcmask 1043456   ;;  %s2628_s1 = inlined_call_operand.vmem [shape: bf16[3,128,256], index: 1, kind: input, shape index: {}]   ;;  %s2629_s0 = inlined_call_operand.vmem [shape: f32[2,8,128], index: 0, kind: input, shape index: {}]   ;;  %s2630_s5 = inlined_call_operand.vmem [shape: f32[256,8], index: 5, kind: input, shape index: {}]   ;;  %s2631_s6 = inlined_call_operand.vmem [shape: f32[8,256], index: 6, kind: input, shape index: {}]   ;;  %s2632_s2 = inlined_call_operand.vmem [shape: bf16[3,256,128], index: 2, kind: input, shape index: {}]   ;;  %s2633_s3 = inlined_call_operand.vmem [shape: f32[2,8], index: 3, kind: input, shape index: {}]   ;;  %s2634_s7 = inlined_call_operand.vmem [shape: f32[128,4], index: 7, kind: input, shape index: {}]   ;;  %s2635_s8 = inlined_call_operand.vmem [shape: f32[4,128], index: 8, kind: input, shape index: {}]   ;;  %s2636_s4 = inlined_call_operand.vmem [shape: f32[2,4], index: 4, kind: input, shape index: {}]   ;;  %s2637_s9 = inlined_call_operand.vmem [shape: f32[2,8,128], index: 9, kind: output, shape index: {}]  }
   0x1   :  { %v1902_v0 = vld [vmem:[%s2628_s1 + $0xf4] ss:$8 sps:$4 sm:$0xff]   ;;  %165 = vmatprep.mubr.bf16.mxu0 %v2028_v1  ;;  %308 = vmatprep.mubr.bf16.mxu1 %v2028_v1  ;;  %v1904_v2 = vld [vmem:[%s2628_s1 + $0xf0] ss:$8 sps:$4 sm:$0xff]   ;;  %v1905_v3 = vld [vmem:[%s2628_s1 + $0xe4] ss:$8 sps:$4 sm:$0xff]  }
   0x2   :  { %133 = vmatprep.subr.bf16.mxu0 %v1902_v0  ;;  %v1907_v4 = vld [vmem:[%s2628_s1 + $0xe0] ss:$8 sps:$4 sm:$0xff]   ;;  %v1908_v5 = vld [vmem:[%s2628_s1 + $0x74] ss:$8 sps:$4 sm:$0xff]   ;;  %v1910_v6 = vld [vmem:[%s2628_s1 + $0x70] ss:$8 sps:$4 sm:$0xff]  }
   0x3   :  { %134 = vmatpush1.bf16.msra.mxu0 %v1904_v2  ;;  %v1911_v7 = vld [vmem:[%s2628_s1 + $0xd4] ss:$8 sps:$4 sm:$0xff]   ;;  %276 = vmatprep.subr.bf16.mxu1 %v1908_v5  ;;  %v1914_v8 = vld [vmem:[%s2628_s1 + $0x64] ss:$8 sps:$4 sm:$0xff]   ;;  %v1916_v9 = vld [vmem:[%s2628_s1 + $0x60] ss:$8 sps:$4 sm:$0xff]  }
   0x4   :  { %135 = vmatprep.subr.bf16.mxu0 %v1905_v3  ;;  %277 = vmatpush1.bf16.msra.mxu1 %v1910_v6  ;;  %v1913_v10 = vld [vmem:[%s2628_s1 + $0xd0] ss:$8 sps:$4 sm:$0xff]   ;;  %v1917_v11 = vld [vmem:[%s2628_s1 + $0xc4] ss:$8 sps:$4 sm:$0xff]   ;;  %v1920_v12 = vld [vmem:[%s2628_s1 + $0x54] ss:$8 sps:$4 sm:$0xff]  }
   0x5   :  { %278 = vmatprep.subr.bf16.mxu1 %v1914_v8  ;;  %v1922_v13 = vld [vmem:[%s2628_s1 + $0x50] ss:$8 sps:$4 sm:$0xff]   ;;  %v1919_v14 = vld [vmem:[%s2628_s1 + $0xc0] ss:$8 sps:$4 sm:$0xff]   ;;  %v1926_v15 = vld [vmem:[%s2628_s1 + $0x44] ss:$8 sps:$4 sm:$0xff]  }
   0x6   :  { %v1923_v16 = vld [vmem:[%s2628_s1 + $0xb4] ss:$8 sps:$4 sm:$0xff]   ;;  %v1928_v17 = vld [vmem:[%s2628_s1 + $0x40] ss:$8 sps:$4 sm:$0xff]   ;;  %v1925_v18 = vld [vmem:[%s2628_s1 + $0xb0] ss:$8 sps:$4 sm:$0xff]  }
   0x7   :  { %136 = vmatpush1.bf16.msra.mxu0 %v1907_v4  ;;  %v1932_v19 = vld [vmem:[%s2628_s1 + $0x34] ss:$8 sps:$4 sm:$0xff]   ;;  %v1929_v20 = vld [vmem:[%s2628_s1 + $0xa4] ss:$8 sps:$4 sm:$0xff]   ;;  %v1934_v21 = vld [vmem:[%s2628_s1 + $0x30] ss:$8 sps:$4 sm:$0xff]  }
   0x8   :  { %137 = vmatprep.subr.bf16.mxu0 %v1911_v7  ;;  %279 = vmatpush1.bf16.msra.mxu1 %v1916_v9  ;;  %v1931_v22 = vld [vmem:[%s2628_s1 + $0xa0] ss:$8 sps:$4 sm:$0xff]   ;;  %v1938_v23 = vld [vmem:[%s2628_s1 + $0x24] ss:$8 sps:$4 sm:$0xff]   ;;  %v1935_v24 = vld [vmem:[%s2628_s1 + $0x94] ss:$8 sps:$4 sm:$0xff]  }
   0x9   :  { %280 = vmatprep.subr.bf16.mxu1 %v1920_v12  ;;  %v1937_v25 = vld [vmem:[%s2628_s1 + $0x90] ss:$8 sps:$4 sm:$0xff]   ;;  %v1940_v26 = vld [vmem:[%s2628_s1 + $0x20] ss:$8 sps:$4 sm:$0xff]   ;;  %v1944_v27 = vld [vmem:[%s2628_s1 + $0x14] ss:$8 sps:$4 sm:$0xff]  }
   0xa   :  { %v1941_v28 = vld [vmem:[%s2628_s1 + $0x84] ss:$8 sps:$4 sm:$0xff]   ;;  %v1943_v29 = vld [vmem:[%s2628_s1 + $0x80] ss:$8 sps:$4 sm:$0xff]   ;;  %v1946_v30 = vld [vmem:[%s2628_s1 + $0x10] ss:$8 sps:$4 sm:$0xff]  }
   0xb   :  { %138 = vmatpush1.bf16.msra.mxu0 %v1913_v10  ;;  %v33_v31 = vld [vmem:[%s2629_s0] sm:$0xff]  ;;  %v34_v32 = vld [vmem:[%s2629_s0 + $0x8] sm:$0xff]  ;;  %v1949_v34 = vld [vmem:[%s2628_s1 + $0x174] ss:$8 sps:$4 sm:$0xff]   ;;  %vm1446_vm4 = vcmask 31744  }
   0xc   :  { %139 = vmatprep.subr.bf16.mxu0 %v1917_v11  ;;  %281 = vmatpush1.bf16.msra.mxu1 %v1922_v13  ;;  %v1950_v33 = vld [vmem:[%s2628_s1 + $0x4] ss:$8 sps:$4 sm:$0xff]   ;;  %v35_v35 = vpack.c.bf16 %v34_v32, %v33_v31  ;;  %v1952_v36 = vld [vmem:[%s2628_s1] ss:$8 sps:$4 sm:$0xff]   ;;  %v1947_v37 = vld [vmem:[%s2628_s1 + $0x170] ss:$8 sps:$4 sm:$0xff]  }
   0xd   :  { %282 = vmatprep.subr.bf16.mxu1 %v1926_v15  ;;  %v1955_v38 = vld [vmem:[%s2628_s1 + $0x164] ss:$8 sps:$4 sm:$0xff]   ;;  %v1953_v39 = vld [vmem:[%s2628_s1 + $0x160] ss:$8 sps:$4 sm:$0xff]   ;;  %v1958_v40 = vld [vmem:[%s2628_s1 + $0x154] ss:$8 sps:$4 sm:$0xff]  }
   0xe   :  { %v1956_v41 = vld [vmem:[%s2628_s1 + $0x150] ss:$8 sps:$4 sm:$0xff]   ;;  %v1961_v42 = vld [vmem:[%s2628_s1 + $0x144] ss:$8 sps:$4 sm:$0xff]   ;;  %v1959_v43 = vld [vmem:[%s2628_s1 + $0x140] ss:$8 sps:$4 sm:$0xff]  }
   0xf   :  { %140 = vmatpush1.bf16.msra.mxu0 %v1919_v14  ;;  %v1964_v44 = vld [vmem:[%s2628_s1 + $0x134] ss:$8 sps:$4 sm:$0xff]   ;;  %v1962_v45 = vld [vmem:[%s2628_s1 + $0x130] ss:$8 sps:$4 sm:$0xff]   ;;  %v1967_v46 = vld [vmem:[%s2628_s1 + $0x124] ss:$8 sps:$4 sm:$0xff]  }
  0x10   :  { %141 = vmatprep.subr.bf16.mxu0 %v1923_v16  ;;  %283 = vmatpush1.bf16.msra.mxu1 %v1928_v17  ;;  %v1965_v47 = vld [vmem:[%s2628_s1 + $0x120] ss:$8 sps:$4 sm:$0xff]   ;;  %v1970_v48 = vld [vmem:[%s2628_s1 + $0x114] ss:$8 sps:$4 sm:$0xff]   ;;  %v1968_v49 = vld [vmem:[%s2628_s1 + $0x110] ss:$8 sps:$4 sm:$0xff]  }
  0x11   :  { %284 = vmatprep.subr.bf16.mxu1 %v1932_v19  ;;  %v1973_v50 = vld [vmem:[%s2628_s1 + $0x104] ss:$8 sps:$4 sm:$0xff]   ;;  %v1971_v51 = vld [vmem:[%s2628_s1 + $0x100] ss:$8 sps:$4 sm:$0xff]   ;;  %v581_v52 = vld [vmem:[%s2630_s5 + $0xf8] sm:$0xff] }
  0x12   :  { %v565_v53 = vld [vmem:[%s2630_s5 + $0x78] sm:$0xff]  ;;  %v580_v54 = vld [vmem:[%s2630_s5 + $0xf0] sm:$0xff]  ;;  %v579_v56 = vld [vmem:[%s2630_s5 + $0xe8] sm:$0xff] }
  0x13   :  { %142 = vmatpush1.bf16.msra.mxu0 %v1925_v18  ;;  %v564_v55 = vld [vmem:[%s2630_s5 + $0x70] sm:$0xff]  ;;  %v563_v57 = vld [vmem:[%s2630_s5 + $0x68] sm:$0xff]  ;;  %v578_v58 = vld [vmem:[%s2630_s5 + $0xe0] sm:$0xff] }
  0x14   :  { %143 = vmatprep.subr.bf16.mxu0 %v1929_v20  ;;  %285 = vmatpush1.bf16.msra.mxu1 %v1934_v21  ;;  %v562_v59 = vld [vmem:[%s2630_s5 + $0x60] sm:$0xff]  ;;  %v577_v60 = vld [vmem:[%s2630_s5 + $0xd8] sm:$0xff]  ;;  %v576_v62 = vld [vmem:[%s2630_s5 + $0xd0] sm:$0xff] }
  0x15   :  { %286 = vmatprep.subr.bf16.mxu1 %v1938_v23  ;;  %v561_v61 = vld [vmem:[%s2630_s5 + $0x58] sm:$0xff]  ;;  %v560_v63 = vld [vmem:[%s2630_s5 + $0x50] sm:$0xff]  ;;  %v575_v0 = vld [vmem:[%s2630_s5 + $0xc8] sm:$0xff] }
  0x16   :  { %v574_v2 = vld [vmem:[%s2630_s5 + $0xc0] sm:$0xff]  ;;  %v573_v4 = vld [vmem:[%s2630_s5 + $0xb8] sm:$0xff]  ;;  %v572_v6 = vld [vmem:[%s2630_s5 + $0xb0] sm:$0xff] }
  0x17   :  { %144 = vmatpush1.bf16.msra.mxu0 %v1931_v22  ;;  %v558_v3 = vld [vmem:[%s2630_s5 + $0x40] sm:$0xff]  ;;  %v557_v5 = vld [vmem:[%s2630_s5 + $0x38] sm:$0xff]  ;;  %v556_v7 = vld [vmem:[%s2630_s5 + $0x30] sm:$0xff] }
  0x18   :  { %145 = vmatprep.subr.bf16.mxu0 %v1935_v24  ;;  %287 = vmatpush1.bf16.msra.mxu1 %v1940_v26  ;;  %v571_v8 = vld [vmem:[%s2630_s5 + $0xa8] sm:$0xff]  ;;  %v570_v10 = vld [vmem:[%s2630_s5 + $0xa0] sm:$0xff]  ;;  %v569_v12 = vld [vmem:[%s2630_s5 + $0x98] sm:$0xff] }
  0x19   :  { %288 = vmatprep.subr.bf16.mxu1 %v1944_v27  ;;  %v555_v9 = vld [vmem:[%s2630_s5 + $0x28] sm:$0xff]  ;;  %v554_v11 = vld [vmem:[%s2630_s5 + $0x20] sm:$0xff]  ;;  %v553_v13 = vld [vmem:[%s2630_s5 + $0x18] sm:$0xff] }
  0x1a   :  { %v568_v14 = vld [vmem:[%s2630_s5 + $0x90] sm:$0xff]  ;;  %v567_v16 = vld [vmem:[%s2630_s5 + $0x88] sm:$0xff]  ;;  %v566_v18 = vld [vmem:[%s2630_s5 + $0x80] sm:$0xff] }
  0x1b   :  { %146 = vmatpush1.bf16.msra.mxu0 %v1937_v25  ;;  %v552_v15 = vld [vmem:[%s2630_s5 + $0x10] sm:$0xff]  ;;  %v551_v17 = vld [vmem:[%s2630_s5 + $0x8] sm:$0xff]  ;;  %v550_v19 = vld [vmem:[%s2630_s5] sm:$0xff] }
  0x1c   :  { %147 = vmatprep.subr.bf16.mxu0 %v1941_v28  ;;  %289 = vmatpush1.bf16.msra.mxu1 %v1946_v30 }
  0x1d   :  { %290 = vmatprep.subr.bf16.mxu1 %v1950_v33 }
  0x1f   :  { %148 = vmatpush1.bf16.msra.mxu0 %v1943_v29 }
  0x20   :  { %416 = vmatprep.subr.bf16.mxu0 %v1949_v34  ;;  %291 = vmatpush1.bf16.msra.mxu1 %v1952_v36 }
  0x21   :  { %1739 = vmatprep.subr.mxu1 %v581_v52 }
  0x22   :  { %166 = vmatmul.mubr.bf16.vlgmr.msra.gmra.mxu0 %v35_v35 }
  0x23   :  { %417 = vmatpush1.bf16.msra.mxu0 %v1947_v37  ;;  %448 = vmatprep.mubr.bf16.mxu0 %v2028_v1  ;;  %v559_v1 = vld [vmem:[%s2630_s5 + $0x48] sm:$0xff] }
  0x24   :  { %418 = vmatprep.subr.bf16.mxu0 %v1955_v38  ;;  %309 = vmatmul.mubr.bf16.vlgmr.msra.gmra.mxu1 %v35_v35 }
  0x25   :  { %1740 = vmatpush3.msra.mxu1 %v565_v53 }
  0x26   :  { %1741 = vmatprep.subr.mxu1 %v580_v54 }
  0x27   :  { %419 = vmatpush1.bf16.msra.mxu0 %v1953_v39  ;;  %1742 = vmatpush3.msra.mxu1 %v564_v55 }
  0x28   :  { %420 = vmatprep.subr.bf16.mxu0 %v1958_v40  ;;  %1743 = vmatprep.subr.mxu1 %v579_v56 }
  0x29   :  { %1744 = vmatpush3.msra.mxu1 %v563_v57 }
  0x2a   :  { %1745 = vmatprep.subr.mxu1 %v578_v58 }
  0x2b   :  { %421 = vmatpush1.bf16.msra.mxu0 %v1956_v41  ;;  %1746 = vmatpush3.msra.mxu1 %v562_v59 }
  0x2c   :  { %422 = vmatprep.subr.bf16.mxu0 %v1961_v42  ;;  %1747 = vmatprep.subr.mxu1 %v577_v60 }
  0x2d   :  { %1748 = vmatpush3.msra.mxu1 %v561_v61 }
  0x2e   :  { %1749 = vmatprep.subr.mxu1 %v576_v62 }
  0x2f   :  { %423 = vmatpush1.bf16.msra.mxu0 %v1959_v43  ;;  %1750 = vmatpush3.msra.mxu1 %v560_v63 }
  0x30   :  { %424 = vmatprep.subr.bf16.mxu0 %v1964_v44  ;;  %1751 = vmatprep.subr.mxu1 %v575_v0 }
  0x31   :  { %1752 = vmatpush3.msra.mxu1 %v559_v1 }
  0x32   :  { %1753 = vmatprep.subr.mxu1 %v574_v2 }
  0x33   :  { %425 = vmatpush1.bf16.msra.mxu0 %v1962_v45  ;;  %1754 = vmatpush3.msra.mxu1 %v558_v3 }
  0x34   :  { %426 = vmatprep.subr.bf16.mxu0 %v1967_v46  ;;  %1755 = vmatprep.subr.mxu1 %v573_v4 }
  0x35   :  { %1756 = vmatpush3.msra.mxu1 %v557_v5 }
  0x36   :  { %1757 = vmatprep.subr.mxu1 %v572_v6 }
  0x37   :  { %427 = vmatpush1.bf16.msra.mxu0 %v1965_v47  ;;  %1758 = vmatpush3.msra.mxu1 %v556_v7 }
  0x38   :  { %428 = vmatprep.subr.bf16.mxu0 %v1970_v48  ;;  %1759 = vmatprep.subr.mxu1 %v571_v8 }
  0x39   :  { %1760 = vmatpush3.msra.mxu1 %v555_v9 }
  0x3a   :  { %1761 = vmatprep.subr.mxu1 %v570_v10 }
  0x3b   :  { %429 = vmatpush1.bf16.msra.mxu0 %v1968_v49  ;;  %1762 = vmatpush3.msra.mxu1 %v554_v11 }
  0x3c   :  { %430 = vmatprep.subr.bf16.mxu0 %v1973_v50  ;;  %1763 = vmatprep.subr.mxu1 %v569_v12  ;;  %v511_v12 = vlaneseq }
  0x3d   :  { %1764 = vmatpush3.msra.mxu1 %v553_v13 }
  0x3e   :  { %1765 = vmatprep.subr.mxu1 %v568_v14 }
  0x3f   :  { %431 = vmatpush1.bf16.msra.mxu0 %v1971_v51  ;;  %1766 = vmatpush3.msra.mxu1 %v552_v15 }
  0x40   :  { %1767 = vmatprep.subr.mxu1 %v567_v16 }
  0x41   :  { %1768 = vmatpush3.msra.mxu1 %v551_v17 }
  0x42   :  { %449 = vmatmul.mubr.bf16.vlgmr.msra.gmra.mxu0 %v35_v35  ;;  %1769 = vmatprep.subr.mxu1 %v566_v18 }
  0x43   :  { %1770 = vmatpush3.msra.mxu1 %v550_v19 }
  0xe2   :  { %v167_v20 = vpop.f32.mrf.mxu0 }
  0xe3   :  { %176 = vst [vmem:[#allocation2 + $0x10] sm:$0xff] %v167_v20  ;;  %v2350_v20 = vshrl.u32 %v511_v12, 7  ;;  %v1992_v12 = vld [vmem:[%s2632_s2 + $0x58] sm:$0xff]  }
  0xe4   :  { %v169_v21 = vpop.f32.mrf.mxu0  ;;  %v310_v22 = vpop.f32.mrf.mxu1 }
  0xe5   :  { %177 = vst [vmem:[#allocation2] sm:$0xff] %v169_v21  ;;  %v467_v24 = vrot.slane %v310_v22, 7  ;;  %vm545_vm0 = vcmp.eq.s32.totalorder %v2350_v20, 0 }
  0xe6   :  { %v171_v23 = vpop.f32.mrf.mxu0  ;;  %v312_v25 = vpop.f32.mrf.mxu1 }
  0xe7   :  { %178 = vst [vmem:[#allocation2 + $0x18] sm:$0xff] %v171_v23  ;;  %v468_v27 = vrot.slane %v312_v25, 7 }
  0xe8   :  { %v173_v26 = vpop.f32.mrf.mxu0  ;;  %v314_v28 = vpop.f32.mrf.mxu1 }
  0xe9   :  { %179 = vst [vmem:[#allocation2 + $0x8] sm:$0xff] %v173_v26  ;;  %v469_v31 = vrot.slane %v314_v28, 7 }
  0xea   :  { %v459_v29 = vld [vmem:[#allocation2 + $0x10] sm:$0xfe]  ;;  %v316_v32 = vpop.f32.mrf.mxu1 }
  0xeb   :  { %v475_v30 = vadd.f32 %v467_v24, %v459_v29  ;;  %v470_v35 = vrot.slane %v316_v32, 7  ;;  %v678_v32 = vld [vmem:[%s2631_s6 + $0x8] sm:$0xff] }
  0xec   :  { %v460_v33 = vld [vmem:[#allocation2] sm:$0xfe]  ;;  %713 = vmatprep.subr.mxu1 %v678_v32 }
  0xed   :  { %479 = vst [vmem:[#allocation2 + $0x10] sm:$0xfe] %v475_v30  ;;  %v476_v34 = vadd.f32 %v468_v27, %v460_v33  ;;  %v677_v33 = vld [vmem:[%s2631_s6] sm:$0xff] }
  0xee   :  { %v461_v36 = vld [vmem:[#allocation2 + $0x18] sm:$0xfe] }
  0xef   :  { %480 = vst [vmem:[#allocation2] sm:$0xfe] %v476_v34  ;;  %v477_v37 = vadd.f32 %v469_v31, %v461_v36  ;;  %v2029_v34 = vmov 0.0   ;;  %v1975_v36 = vld [vmem:[%s2632_s2 + $0xb8] sm:$0xff]  }
  0xf0   :  { %v462_v38 = vld [vmem:[#allocation2 + $0x8] sm:$0xfe] }
  0xf1   :  { %481 = vst [vmem:[#allocation2 + $0x18] sm:$0xfe] %v477_v37  ;;  %v478_v39 = vadd.f32 %v470_v35, %v462_v38  ;;  %v1974_v35 = vld [vmem:[%s2632_s2 + $0xf8] sm:$0xff]   ;;  %v1978_v38 = vld [vmem:[%s2632_s2 + $0xf0] sm:$0xff]  }
  0xf2   :  { %1774 = vmatprep.subr.bf16.mxu0 %v1974_v35  ;;  %v1976_v37 = vld [vmem:[%s2632_s2 + $0x78] sm:$0xff]  }
  0xf3   :  { %482 = vst [vmem:[#allocation2 + $0x8] sm:$0xfe] %v478_v39  ;;  %1775 = vmatpush3.bf16.msra.mxu0 %v1975_v36  ;;  %v1979_v39 = vld [vmem:[%s2632_s2 + $0xb0] sm:$0xff]  }
  0xf4   :  { %v483_v42 = vld [vmem:[#allocation2 + $0x10] sm:$0x7f]  ;;  %1776 = vmatprep.subr.bf16.mxu0 %v1978_v38 }
  0xf6   :  { %v484_v46 = vld [vmem:[#allocation2] sm:$0x7f] }
  0xf7   :  { %1777 = vmatpush3.bf16.msra.mxu0 %v1979_v39 }
  0xf8   :  { %v485_v50 = vld [vmem:[#allocation2 + $0x18] sm:$0x7f] }
  0xfa   :  { %v486_v54 = vld [vmem:[#allocation2 + $0x8] sm:$0x7f] }
 0x102   :  { %v450_v40 = vpop.f32.mrf.mxu0 }
 0x103   :  { %v491_v41 = vrot.slane %v450_v40, 1  ;;  %v1982_v40 = vld [vmem:[%s2632_s2 + $0xe8] sm:$0xff]  }
 0x104   :  { %v452_v43 = vpop.f32.mrf.mxu0  ;;  %1778 = vmatprep.subr.bf16.mxu0 %v1982_v40 }
 0x105   :  { %v499_v44 = vadd.f32 %v491_v41, %v483_v42  ;;  %v492_v45 = vrot.slane %v452_v43, 1  ;;  %v1983_v41 = vld [vmem:[%s2632_s2 + $0xa8] sm:$0xff]   ;;  %v1986_v42 = vld [vmem:[%s2632_s2 + $0xe0] sm:$0xff]  }
 0x106   :  { %v454_v47 = vpop.f32.mrf.mxu0  ;;  %1779 = vmatpush3.bf16.msra.mxu0 %v1983_v41  ;;  %v1987_v43 = vld [vmem:[%s2632_s2 + $0xa0] sm:$0xff]  }
 0x107   :  { %503 = vst [vmem:[#allocation2 + $0x10] sm:$0x7f] %v499_v44  ;;  %v500_v48 = vadd.f32 %v492_v45, %v484_v46  ;;  %v493_v49 = vrot.slane %v454_v47, 1  ;;  %1780 = vmatprep.subr.bf16.mxu0 %v1986_v42  ;;  %v1990_v44 = vld [vmem:[%s2632_s2 + $0xd8] sm:$0xff]  }
 0x108   :  { %v456_v51 = vpop.f32.mrf.mxu0  ;;  %v1991_v45 = vld [vmem:[%s2632_s2 + $0x98] sm:$0xff]  }
 0x109   :  { %504 = vst [vmem:[#allocation2] sm:$0x7f] %v500_v48  ;;  %v501_v52 = vadd.f32 %v493_v49, %v485_v50  ;;  %v494_v53 = vrot.slane %v456_v51, 1 }
 0x10a   :  { %1781 = vmatpush3.bf16.msra.mxu0 %v1987_v43 }
 0x10b   :  { %505 = vst [vmem:[#allocation2 + $0x18] sm:$0x7f] %v501_v52  ;;  %v502_v55 = vadd.f32 %v494_v53, %v486_v54  ;;  %1782 = vmatprep.subr.bf16.mxu0 %v1990_v44 }
 0x10d   :  { %506 = vst [vmem:[#allocation2 + $0x8] sm:$0x7f] %v502_v55  ;;  %v658_v55 = vld [vmem:[%s2633_s3] sm:$0x1] }
 0x10e   :  { %v2330_v56 = vld [vmem:[#allocation2 + $0x10] sm:$0xff]  ;;  %1783 = vmatpush3.bf16.msra.mxu0 %v1991_v45 }
 0x10f   :  { %v527_v60 = vmul.f32 %v2330_v56, %v2330_v56 }
 0x110   :  { %v2332_v57 = vld [vmem:[#allocation2] sm:$0xff] }
 0x111   :  { %v528_v63 = vmul.f32 %v2332_v57, %v2332_v57 }
 0x112   :  { %v2334_v58 = vld [vmem:[#allocation2 + $0x18] sm:$0xff] }
 0x113   :  { %v513_v59 = vadd.f32 %v2334_v58, %v2330_v56  ;;  %v529_v61 = vmul.f32 %v2334_v58, %v2334_v58 }
 0x114   :  { %v2342_v62 = vld [vmem:[#allocation2 + $0x8] sm:$0xff] }
 0x115   :  { %v520_v0 = vadd.f32 %v2342_v62, %v2332_v57  ;;  %v530_v1 = vmul.f32 %v2342_v62, %v2342_v62  ;;  %v514_v2 = vrot.slane %v513_v59, 4  ;;  %v531_v3 = vadd.f32 %v529_v61, %v527_v60  ;;  %v665_v61 = vld [vmem:[%s2633_s3 + $0x1] sm:$0x1] }
 0x117   :  { %v521_v4 = vrot.slane %v520_v0, 4  ;;  %v538_v5 = vadd.f32 %v530_v1, %v528_v63  ;;  %v515_v6 = vadd.f32 %v514_v2, %v513_v59  ;;  %v532_v7 = vrot.slane %v531_v3, 4 }
 0x118   :  { %v2404_v63 = vsub.s32 0, %v2350_v20 }
 0x119   :  { %v522_v8 = vadd.f32 %v521_v4, %v520_v0  ;;  %v539_v9 = vrot.slane %v538_v5, 4  ;;  %v516_v10 = vrot.slane %v515_v6, 2  ;;  %v533_v11 = vadd.f32 %v532_v7, %v531_v3  ;;  %v1977_v4 = vld [vmem:[%s2632_s2 + $0x38] sm:$0xff]   ;;  %v1981_v7 = vld [vmem:[%s2632_s2 + $0x30] sm:$0xff]  }
 0x11b   :  { %v523_v13 = vrot.slane %v522_v8, 2  ;;  %v540_v14 = vadd.f32 %v539_v9, %v538_v5  ;;  %v534_v15 = vrot.slane %v533_v11, 2  ;;  %v517_v16 = vadd.f32 %v516_v10, %v515_v6  ;;  %v1980_v5 = vld [vmem:[%s2632_s2 + $0x70] sm:$0xff]   ;;  %v1985_v9 = vld [vmem:[%s2632_s2 + $0x28] sm:$0xff]   ;;  %v1988_v10 = vld [vmem:[%s2632_s2 + $0x60] sm:$0xff]  }
 0x11d   :  { %v524_v17 = vadd.f32 %v523_v13, %v522_v8  ;;  %v541_v18 = vrot.slane %v540_v14, 2  ;;  %v535_v19 = vadd.f32 %v534_v15, %v533_v11  ;;  %v518_v24 = vrot.slane %v517_v16, 1  ;;  %v1984_v8 = vld [vmem:[%s2632_s2 + $0x68] sm:$0xff]   ;;  %v1989_v11 = vld [vmem:[%s2632_s2 + $0x20] sm:$0xff]   ;;  %v1993_v13 = vld [vmem:[%s2632_s2 + $0x18] sm:$0xff]  }
 0x11e   :  { %v1995_v15 = vld [vmem:[%s2632_s2 + $0x90] sm:$0xff]  }
 0x11f   :  { %v525_v21 = vrot.slane %v524_v17, 1  ;;  %v542_v22 = vadd.f32 %v541_v18, %v540_v14  ;;  %v536_v23 = vrot.slane %v535_v19, 1  ;;  %v519_v29 = vadd.f32 %v518_v24, %v517_v16  ;;  %v1994_v14 = vld [vmem:[%s2632_s2 + $0xd0] sm:$0xff]   ;;  %v1998_v18 = vld [vmem:[%s2632_s2 + $0xc8] sm:$0xff]   ;;  %v2003_v24 = vld [vmem:[%s2632_s2 + $0x80] sm:$0xff]  }
 0x120   :  { %v1996_v16 = vld [vmem:[%s2632_s2 + $0x50] sm:$0xff]   ;;  %1784 = vmatprep.subr.bf16.mxu0 %v1994_v14  ;;  %v1337_v14 = vld [vmem:[%s2634_s7 + $0x18] sm:$0xff] }
 0x121   :  { %v543_v25 = vrot.slane %v542_v22, 1  ;;  %v537_v26 = vadd.f32 %v536_v23, %v535_v19  ;;  %v526_v27 = vadd.f32 %v525_v21, %v524_v17  ;;  %v1997_v17 = vld [vmem:[%s2632_s2 + $0x10] sm:$0xff]   ;;  %1785 = vmatpush3.bf16.msra.mxu0 %v1995_v15  ;;  %v1999_v19 = vld [vmem:[%s2632_s2 + $0x88] sm:$0xff]   ;;  %v2002_v23 = vld [vmem:[%s2632_s2 + $0xc0] sm:$0xff]  }
 0x122   :  { %v2000_v21 = vld [vmem:[%s2632_s2 + $0x48] sm:$0xff]   ;;  %1786 = vmatprep.subr.bf16.mxu0 %v1998_v18  ;;  %v1336_v15 = vld [vmem:[%s2634_s7 + $0x10] sm:$0xff] }
 0x123   :  { %v544_v28 = vadd.f32 %v543_v25, %v542_v22  ;;  %v548_v31 = vsel %vm545_vm0, %v519_v29, %v537_v26  ;;  %v2001_v22 = vld [vmem:[%s2632_s2 + $0x8] sm:$0xff]   ;;  %v2004_v25 = vld [vmem:[%s2632_s2 + $0x40] sm:$0xff]  }
 0x124   :  { %v2005_v26 = vld [vmem:[%s2632_s2] sm:$0xff]  }
 0x125   :  { %v549_v30 = vsel %vm545_vm0, %v526_v27, %v544_v28  ;;  %1787 = vmatpush3.bf16.msra.mxu0 %v1999_v19  ;;  %v2006_v27 = vld [vmem:[%s2632_s2 + $0x178] sm:$0xff]   ;;  %v2478_v28 = vsub.s32 1, %v2350_v20 }
 0x126   :  { %646 = vmatprep.mubr.f32.mxu1 %v549_v30  ;;  %1788 = vmatprep.subr.bf16.mxu0 %v2002_v23 }
 0x127   :  { %647 = vmatmul.mubr.f32.vlgmr.msra.gmra.mxu1 %v548_v31 }
 0x128   :  { %747 = vmatprep.mubr.f32.mxu1 %v2029_v34  ;;  %714 = vmatpush1.msra.mxu1 %v677_v33 }
 0x129   :  { %1796 = vmatprep.subr.bf16.mxu1 %v1976_v37  ;;  %1789 = vmatpush3.bf16.msra.mxu0 %v2003_v24 }
 0x12a   :  { %1818 = vmatprep.subr.bf16.mxu0 %v2006_v27 }
 0x1e7   :  { %v1771_v46 = vpop.f32.mrf.mxu1 }
 0x1e9   :  { %v1772_v47 = vpop.f32.mrf.mxu1 }
 0x1ea   :  { %v1773_v48 = vadd.f32 %v1772_v47, %v1771_v46 }
 0x1ec   :  { %v652_v49 = vmul.f32 0.001953125, %v1773_v48 }
 0x1ee   :  { %v653_v50 = vmul.f32 %v652_v49, %v652_v49 }
 0x1f0   :  { %v655_v51 = vrot.slane %v653_v50, 7  ;;  %v2011_v50 = vld [vmem:[%s2632_s2 + $0x128] sm:$0xff]  }
 0x1f2   :  { %v657_v52 = vsub.f32 %v652_v49, %v655_v51  ;;  %v2012_v51 = vld [vmem:[%s2632_s2 + $0x160] sm:$0xff]  }
 0x1f4   :  { %v659_v53 = vadd.f32 1e-05, %v657_v52  ;;  %v2013_v52 = vld [vmem:[%s2632_s2 + $0x120] sm:$0xff]  }
 0x1f6   :  { %2022 = vrsqrt.f32 %v659_v53  ;;  %v2014_v53 = vld [vmem:[%s2632_s2 + $0x158] sm:$0xff]  }
 0x203   :  { %v2023_v54 = vpop.eup %2022 }
 0x204   :  { %v662_v59 = vrot.slane %v2023_v54, 1  ;;  %v2015_v54 = vld [vmem:[%s2632_s2 + $0x118] sm:$0xff]  }
 0x206   :  { %v664_v60 = vmul.f32 %v662_v59, %v658_v55  ;;  %v2016_v55 = vld [vmem:[%s2632_s2 + $0x150] sm:$0xff]  }
 0x207   :  { %v2017_v59 = vld [vmem:[%s2632_s2 + $0x110] sm:$0xff]  }
 0x208   :  { %v666_v0 = vmul.f32 %v664_v60, %v652_v49  ;;  %v671_v2 = vrot.slane %v664_v60, %v2404_v63  ;;  %v2008_v49 = vld [vmem:[%s2632_s2 + $0x170] sm:$0xff]   ;;  %v2018_v60 = vld [vmem:[%s2632_s2 + $0x148] sm:$0xff]  }
 0x20a   :  { %v667_v1 = vsub.f32 %v665_v61, %v666_v0  ;;  %v2019_v61 = vld [vmem:[%s2632_s2 + $0x108] sm:$0xff]   ;;  %v2020_v0 = vld [vmem:[%s2632_s2 + $0x140] sm:$0xff]  }
 0x20c   :  { %v675_v3 = vrot.slane %v667_v1, %v2404_v63  ;;  %v2021_v1 = vld [vmem:[%s2632_s2 + $0x100] sm:$0xff]  }
 0x20e   :  { %v676_v6 = vsel %vm545_vm0, %v671_v2, %v675_v3  ;;  %v1349_v2 = vld [vmem:[%s2634_s7 + $0x78] sm:$0xff]  ;;  %v1348_v3 = vld [vmem:[%s2634_s7 + $0x70] sm:$0xff] }
 0x20f   :  { %1624 = vmatmul.mubr.msk.f32.vlgmr.msra.gmra.mxu1 %vm679_vm1, %v676_v6  ;;  %v1345_v6 = vld [vmem:[%s2634_s7 + $0x58] sm:$0xff] }
 0x210   :  { %1797 = vmatpush3.bf16.msra.mxu1 %v1977_v4  ;;  %v1347_v4 = vld [vmem:[%s2634_s7 + $0x68] sm:$0xff] }
 0x211   :  { %1798 = vmatprep.subr.bf16.mxu1 %v1980_v5  ;;  %v1346_v5 = vld [vmem:[%s2634_s7 + $0x60] sm:$0xff] }
 0x214   :  { %1799 = vmatpush3.bf16.msra.mxu1 %v1981_v7  ;;  %v1344_v7 = vld [vmem:[%s2634_s7 + $0x50] sm:$0xff] }
 0x215   :  { %1800 = vmatprep.subr.bf16.mxu1 %v1984_v8  ;;  %v1343_v8 = vld [vmem:[%s2634_s7 + $0x48] sm:$0xff] }
 0x218   :  { %1801 = vmatpush3.bf16.msra.mxu1 %v1985_v9  ;;  %v1342_v9 = vld [vmem:[%s2634_s7 + $0x40] sm:$0xff] }
 0x219   :  { %1802 = vmatprep.subr.bf16.mxu1 %v1988_v10  ;;  %v1341_v10 = vld [vmem:[%s2634_s7 + $0x38] sm:$0xff] }
 0x21c   :  { %1803 = vmatpush3.bf16.msra.mxu1 %v1989_v11  ;;  %v1340_v11 = vld [vmem:[%s2634_s7 + $0x30] sm:$0xff] }
 0x21d   :  { %1804 = vmatprep.subr.bf16.mxu1 %v1992_v12  ;;  %v1339_v12 = vld [vmem:[%s2634_s7 + $0x28] sm:$0xff] }
 0x220   :  { %1805 = vmatpush3.bf16.msra.mxu1 %v1993_v13  ;;  %v1338_v13 = vld [vmem:[%s2634_s7 + $0x20] sm:$0xff] }
 0x221   :  { %1806 = vmatprep.subr.bf16.mxu1 %v1996_v16  ;;  %v1335_v16 = vld [vmem:[%s2634_s7 + $0x8] sm:$0xff] }
 0x224   :  { %1807 = vmatpush3.bf16.msra.mxu1 %v1997_v17  ;;  %v1334_v17 = vld [vmem:[%s2634_s7] sm:$0xff] }
 0x225   :  { %1808 = vmatprep.subr.bf16.mxu1 %v2000_v21 }
 0x228   :  { %1809 = vmatpush3.bf16.msra.mxu1 %v2001_v22 }
 0x229   :  { %1810 = vmatprep.subr.bf16.mxu1 %v2004_v25 }
 0x22c   :  { %1811 = vmatpush3.bf16.msra.mxu1 %v2005_v26 }
 0x22d   :  { %1859 = vmatprep.subr.mxu1 %v2029_v34 }
 0x2cf   :  { %v749_v29 = vpop.f32.mrf.mxu1 }
 0x2d0   :  { %v757_v30 = vrot.slane %v749_v29, %v2404_v63  ;;  %v769_v35 = vrot.slane %v749_v29, %v2478_v28 }
 0x2d1   :  { %v751_v31 = vpop.f32.mrf.mxu1 }
 0x2d2   :  { %v762_v32 = vmul.f32 %v757_v30, %v2330_v56  ;;  %v764_v33 = vmul.f32 %v757_v30, %v2334_v58  ;;  %v761_v36 = vrot.slane %v751_v31, %v2404_v63  ;;  %v773_v37 = vrot.slane %v751_v31, %v2478_v28  ;;  %v2007_v58 = vld [vmem:[%s2632_s2 + $0x138] sm:$0xff]  }
 0x2d4   :  { %v774_v38 = vadd.f32 %v769_v35, %v762_v32  ;;  %v776_v39 = vadd.f32 %v769_v35, %v764_v33  ;;  %v763_v40 = vmul.f32 %v761_v36, %v2332_v57  ;;  %v765_v41 = vmul.f32 %v761_v36, %v2342_v62  ;;  %v2009_v57 = vld [vmem:[%s2632_s2 + $0x130] sm:$0xff]   ;;  %v2010_v62 = vld [vmem:[%s2632_s2 + $0x168] sm:$0xff]  }
 0x2d6   :  { %v775_v42 = vadd.f32 %v773_v37, %v763_v40  ;;  %v777_v43 = vadd.f32 %v773_v37, %v765_v41  ;;  %v778_v44 = vmax.f32 %v774_v38, 0.0  ;;  %v780_v45 = vmax.f32 %v776_v39, 0.0 }
 0x2d8   :  { %v779_v46 = vmax.f32 %v775_v42, 0.0  ;;  %v781_v56 = vmax.f32 %v777_v43, 0.0  ;;  %v782_v48 = vpack.c.bf16 %v780_v45, %v778_v44 }
 0x2da   :  { %v783_v47 = vpack.c.bf16 %v781_v56, %v779_v46 }
 0x2dc   :  { %945 = vmatprep.mubr.bf16.mxu0 %v783_v47  ;;  %1116 = vmatprep.mubr.bf16.mxu1 %v783_v47 }
 0x2dd   :  { %946 = vmatmul.mubr.bf16.vlgmr.msra.gmra.mxu0 %v782_v48  ;;  %1117 = vmatmul.mubr.bf16.vlgmr.msra.gmra.mxu1 %v782_v48 }
 0x2de   :  { %1819 = vmatpush3.bf16.msra.mxu0 %v2007_v58  ;;  %1286 = vmatprep.mubr.bf16.mxu0 %v783_v47  ;;  %v2026_v58 = vld [vmem:[%s2629_s0] sm:$0xff] }
 0x2df   :  { %1820 = vmatprep.subr.bf16.mxu0 %v2008_v49  ;;  %1860 = vmatpush3.msra.mxu1 %v1349_v2 }
 0x2e0   :  { %1861 = vmatprep.subr.mxu1 %v2029_v34  ;;  %1891 = vmatprep.mubr.msk.f32.mxu1 %vm2030_vm2, %v2029_v34 }
 0x2e1   :  { %1862 = vmatpush3.msra.mxu1 %v1348_v3 }
 0x2e2   :  { %1821 = vmatpush3.bf16.msra.mxu0 %v2009_v57  ;;  %1863 = vmatprep.subr.mxu1 %v2029_v34  ;;  %v2027_v57 = vld [vmem:[%s2629_s0 + $0x8] sm:$0xff] }
 0x2e3   :  { %1822 = vmatprep.subr.bf16.mxu0 %v2010_v62  ;;  %1864 = vmatpush3.msra.mxu1 %v1347_v4 }
 0x2e4   :  { %1865 = vmatprep.subr.mxu1 %v2029_v34 }
 0x2e5   :  { %1866 = vmatpush3.msra.mxu1 %v1346_v5 }
 0x2e6   :  { %1823 = vmatpush3.bf16.msra.mxu0 %v2011_v50  ;;  %1867 = vmatprep.subr.mxu1 %v2029_v34 }
 0x2e7   :  { %1824 = vmatprep.subr.bf16.mxu0 %v2012_v51  ;;  %1868 = vmatpush3.msra.mxu1 %v1345_v6 }
 0x2e8   :  { %1869 = vmatprep.subr.mxu1 %v2029_v34 }
 0x2e9   :  { %1870 = vmatpush3.msra.mxu1 %v1344_v7 }
 0x2ea   :  { %1825 = vmatpush3.bf16.msra.mxu0 %v2013_v52  ;;  %1871 = vmatprep.subr.mxu1 %v2029_v34 }
 0x2eb   :  { %1826 = vmatprep.subr.bf16.mxu0 %v2014_v53  ;;  %1872 = vmatpush3.msra.mxu1 %v1343_v8  ;;  %v1445_v8 = vld [vmem:[%s2635_s8] sm:$0xf] }
 0x2ec   :  { %1873 = vmatprep.subr.mxu1 %v2029_v34 }
 0x2ed   :  { %1874 = vmatpush3.msra.mxu1 %v1342_v9 }
 0x2ee   :  { %1827 = vmatpush3.bf16.msra.mxu0 %v2015_v54  ;;  %1875 = vmatprep.subr.mxu1 %v2029_v34 }
 0x2ef   :  { %1828 = vmatprep.subr.bf16.mxu0 %v2016_v55  ;;  %1876 = vmatpush3.msra.mxu1 %v1341_v10 }
 0x2f0   :  { %1877 = vmatprep.subr.mxu1 %v2029_v34 }
 0x2f1   :  { %1878 = vmatpush3.msra.mxu1 %v1340_v11 }
 0x2f2   :  { %1829 = vmatpush3.bf16.msra.mxu0 %v2017_v59  ;;  %1879 = vmatprep.subr.mxu1 %v2029_v34 }
 0x2f3   :  { %1830 = vmatprep.subr.bf16.mxu0 %v2018_v60  ;;  %1880 = vmatpush3.msra.mxu1 %v1339_v12 }
 0x2f4   :  { %1881 = vmatprep.subr.mxu1 %v2029_v34 }
 0x2f5   :  { %1882 = vmatpush3.msra.mxu1 %v1338_v13 }
 0x2f6   :  { %1831 = vmatpush3.bf16.msra.mxu0 %v2019_v61  ;;  %1883 = vmatprep.subr.mxu1 %v2029_v34 }
 0x2f7   :  { %1832 = vmatprep.subr.bf16.mxu0 %v2020_v0  ;;  %1884 = vmatpush3.msra.mxu1 %v1337_v14 }
 0x2f8   :  { %1885 = vmatprep.subr.mxu1 %v2029_v34 }
 0x2f9   :  { %1886 = vmatpush3.msra.mxu1 %v1336_v15 }
 0x2fa   :  { %1833 = vmatpush3.bf16.msra.mxu0 %v2021_v1  ;;  %1887 = vmatprep.subr.mxu1 %v2029_v34 }
 0x2fb   :  { %1894 = vmatprep.subr.mxu0 %v2029_v34  ;;  %1888 = vmatpush3.msra.mxu1 %v1335_v16 }
 0x2fc   :  { %1889 = vmatprep.subr.mxu1 %v2029_v34 }
 0x2fd   :  { %1287 = vmatmul.mubr.bf16.vlgmr.msra.gmra.mxu0 %v782_v48  ;;  %1890 = vmatpush3.msra.mxu1 %v1334_v17  ;;  %v1426_v17 = vld [vmem:[%s2636_s4] sm:$0x1] }
 0x2fe   :  { %1896 = vmatprep.mubr.msk.f32.mxu0 %vm2030_vm2, %v2029_v34  ;;  %1895 = vmatpush3.msk.msra.mxu0 %vm1450_vm3, %v1445_v8 }
 0x39d   :  { %v1790_v18 = vpop.f32.mrf.mxu0  ;;  %v1812_v19 = vpop.f32.mrf.mxu1 }
 0x39f   :  { %v1791_v21 = vpop.f32.mrf.mxu0  ;;  %v1813_v23 = vpop.f32.mrf.mxu1 }
 0x3a0   :  { %v1792_v22 = vadd.f32 %v1791_v21, %v1790_v18  ;;  %v1814_v29 = vadd.f32 %v1813_v23, %v1812_v19  ;;  %v1433_v21 = vld [vmem:[%s2636_s4 + $0x1] sm:$0x1] }
 0x3a1   :  { %v1793_v24 = vpop.f32.mrf.mxu0  ;;  %v1815_v27 = vpop.f32.mrf.mxu1 }
 0x3a2   :  { %954 = vst [vmem:[#allocation3] sm:$0xff] %v1792_v22 }
 0x3a3   :  { %v1794_v25 = vpop.f32.mrf.mxu0  ;;  %v1816_v31 = vpop.f32.mrf.mxu1 }
 0x3a4   :  { %v1795_v26 = vadd.f32 %v1794_v25, %v1793_v24  ;;  %v1817_v33 = vadd.f32 %v1816_v31, %v1815_v27 }
 0x3a6   :  { %955 = vst [vmem:[#allocation3 + $0x8] sm:$0xff] %v1795_v26 }
 0x3a9   :  { %v1295_v30 = vld [vmem:[#allocation3 + $0x1] sm:$0x7f] }
 0x3aa   :  { %v1297_v32 = vadd.f32 %v1814_v29, %v1295_v30 }
 0x3ac   :  { %1299 = vst [vmem:[#allocation3 + $0x1] sm:$0x7f] %v1297_v32 }
 0x3ad   :  { %v1296_v35 = vld [vmem:[#allocation3 + $0x9] sm:$0x7f] }
 0x3ae   :  { %v1298_v34 = vadd.f32 %v1817_v33, %v1296_v35 }
 0x3b0   :  { %1300 = vst [vmem:[#allocation3 + $0x9] sm:$0x7f] %v1298_v34 }
 0x3b3   :  { %v1301_v41 = vld [vmem:[#allocation3] sm:$0x7f] }
 0x3b7   :  { %v1302_v46 = vld [vmem:[#allocation3 + $0x8] sm:$0x7f] }
 0x3bd   :  { %v1834_v36 = vpop.f32.mrf.mxu0 }
 0x3bf   :  { %v1835_v37 = vpop.f32.mrf.mxu0 }
 0x3c0   :  { %v1836_v38 = vadd.f32 %v1835_v37, %v1834_v36 }
 0x3c1   :  { %v1837_v39 = vpop.f32.mrf.mxu0 }
 0x3c2   :  { %v1305_v40 = vrot.slane %v1836_v38, 1 }
 0x3c3   :  { %v1838_v42 = vpop.f32.mrf.mxu0 }
 0x3c4   :  { %v1309_v43 = vadd.f32 %v1305_v40, %v1301_v41  ;;  %v1839_v44 = vadd.f32 %v1838_v42, %v1837_v39 }
 0x3c6   :  { %1311 = vst [vmem:[#allocation3] sm:$0x7f] %v1309_v43  ;;  %v1306_v45 = vrot.slane %v1839_v44, 1 }
 0x3c8   :  { %v1310_v56 = vadd.f32 %v1306_v45, %v1302_v46 }
 0x3ca   :  { %1312 = vst [vmem:[#allocation3 + $0x8] sm:$0x7f] %v1310_v56 }
 0x3cd   :  { %v1313_v47 = vld [vmem:[#allocation3] sm:$0xff] }
 0x3ce   :  { %v1315_v48 = vadd.f32 %v2026_v58, %v1313_v47 }
 0x3d0   :  { %v1324_v51 = vmul.f32 %v1315_v48, %v1315_v48 }
 0x3d1   :  { %v1314_v49 = vld [vmem:[#allocation3 + $0x8] sm:$0xff] }
 0x3d2   :  { %v1316_v62 = vadd.f32 %v2027_v57, %v1314_v49 }
 0x3d4   :  { %v1317_v50 = vadd.f32 %v1316_v62, %v1315_v48  ;;  %v1325_v52 = vmul.f32 %v1316_v62, %v1316_v62 }
 0x3d6   :  { %v1318_v53 = vrot.slane %v1317_v50, 4  ;;  %v1326_v54 = vadd.f32 %v1325_v52, %v1324_v51 }
 0x3d8   :  { %v1319_v55 = vadd.f32 %v1318_v53, %v1317_v50  ;;  %v1327_v59 = vrot.slane %v1326_v54, 4 }
 0x3da   :  { %v1320_v60 = vrot.slane %v1319_v55, 2  ;;  %v1328_v61 = vadd.f32 %v1327_v59, %v1326_v54 }
 0x3dc   :  { %v1321_v0 = vadd.f32 %v1320_v60, %v1319_v55  ;;  %v1329_v1 = vrot.slane %v1328_v61, 2 }
 0x3de   :  { %v1322_v2 = vrot.slane %v1321_v0, 1  ;;  %v1330_v3 = vadd.f32 %v1329_v1, %v1328_v61 }
 0x3e0   :  { %v1331_v4 = vrot.slane %v1330_v3, 1  ;;  %v1323_v5 = vadd.f32 %v1322_v2, %v1321_v0 }
 0x3e2   :  { %v1332_v6 = vadd.f32 %v1331_v4, %v1330_v3 }
 0x3e4   :  { %v1333_v7 = vsel %vm545_vm0, %v1323_v5, %v1332_v6 }
 0x3e5   :  { %1892 = vmatmul.mubr.f32.vlgmr.msra.gmra.mxu1 %v1333_v7 }
 0x4a5   :  { %v1416_v9 = vpop.f32.mrf.mxu1 }
 0x4a6   :  { %v1420_v10 = vmul.f32 0.001953125, %v1416_v9 }
 0x4a7   :  { %v1893_v11 = vpop.f32.mrf.mxu1 }
 0x4a8   :  { %v1421_v12 = vmul.f32 %v1420_v10, %v1420_v10 }
 0x4aa   :  { %v1423_v13 = vrot.slane %v1421_v12, 7 }
 0x4ac   :  { %v1425_v14 = vsub.f32 %v1420_v10, %v1423_v13 }
 0x4ae   :  { %v1427_v15 = vadd.f32 1e-05, %v1425_v14 }
 0x4b0   :  { %2024 = vrsqrt.f32 %v1427_v15 }
 0x4bd   :  { %v2025_v16 = vpop.eup %2024 }
 0x4be   :  { %v1430_v18 = vrot.slane %v2025_v16, 1 }
 0x4c0   :  { %v1432_v19 = vmul.f32 %v1430_v18, %v1426_v17 }
 0x4c2   :  { %v1434_v22 = vmul.f32 %v1432_v19, %v1420_v10  ;;  %v1439_v24 = vrot.slane %v1432_v19, %v2404_v63 }
 0x4c4   :  { %v1435_v23 = vsub.f32 %v1433_v21, %v1434_v22 }
 0x4c6   :  { %v1443_v25 = vrot.slane %v1435_v23, %v2404_v63 }
 0x4c8   :  { %v1444_v26 = vsel %vm545_vm0, %v1439_v24, %v1443_v25 }
 0x4c9   :  { %1897 = vmatmul.mubr.msk.f32.vlgmr.msra.gmra.mxu0 %vm1446_vm4, %v1444_v26 }
 0x589   :  { %v1520_v27 = vpop.f32.mrf.mxu0 }
 0x58a   :  { %v1527_v29 = vrot.slane %v1520_v27, %v2404_v63  ;;  %v1533_v33 = vrot.slane %v1520_v27, %v2478_v28 }
 0x58b   :  { %v1898_v30 = vpop.f32.mrf.mxu0 }
 0x58c   :  { %v1528_v31 = vmul.f32 %v1527_v29, %v1315_v48  ;;  %v1529_v32 = vmul.f32 %v1527_v29, %v1316_v62 }
 0x58e   :  { %v1534_v35 = vadd.f32 %v1533_v33, %v1528_v31  ;;  %v1535_v34 = vadd.f32 %v1533_v33, %v1529_v32 }
 0x590   :  { %v1536_v36 = vmax.f32 %v1534_v35, 0.0  ;;  %v1537_v37 = vmax.f32 %v1535_v34, 0.0 }
 0x592   :  { %1538 = vst [vmem:[%s2637_s9] sm:$0xff] %v1536_v36  ;;  %1539 = vst [vmem:[%s2637_s9 + $0x8] sm:$0xff] %v1537_v37 }

</bundles_post_ra>
